<compile_context>
chip_gen: v7x
topology: tpu7x:2x2x1
jax: 0.10.0
libtpu: 0.0.40
codegen_flags: <defaults>
</compile_context>

<pallas_src>
import functools

import jax
import jax.numpy as jnp
from jax.experimental import pallas as pl
from jax.experimental.pallas import tpu as pltpu


def _cbam_kernel(x_ref, w1_ref, b1_ref, cm_ref, w2_ref, o_ref, y_ref, pad_ref,
                 *, width, ksize, padw):
    # x_ref : (1, C, HW) input block for one batch element (input dtype)
    # w1_ref: (C, C) f32 VMEM   (1x1 conv weight of channel attention)
    # b1_ref: (C, 1) f32 VMEM   (its bias)
    # cm_ref: (k, HW) f32 VMEM  (per-dx column-validity masks for the flat conv)
    # w2_ref: (2*k*k,) f32 SMEM (spatial-attention kxk conv weight, no bias)
    # o_ref : (1, C, HW) output block
    # y_ref : (C, HW) VMEM scratch, input dtype  (cache of y = x * ca)
    # pad_ref: (2, HW + 2*(p*W+p)) f32 VMEM scratch (flat, zero-framed stats)
    C = x_ref.shape[1]
    HW = x_ref.shape[2]
    base = padw * width + padw            # zero-frame length on each side

    # ---- Channel attention: global avg pool -> 1x1 conv (+bias) -> sigmoid ----
    xf = x_ref[0].astype(jnp.float32)                          # (C, HW), streamed once
    pooled = jnp.mean(xf, axis=1, keepdims=True)               # (C, 1)
    ca = jax.nn.sigmoid(
        jnp.dot(w1_ref[...], pooled, preferred_element_type=jnp.float32)
        + b1_ref[...])                                         # (C, 1)

    # ---- y = x * ca, cached in VMEM for the final scale (x is never re-read) ----
    y = xf * ca                                                # (C, HW) f32
    y_ref[...] = y.astype(y_ref.dtype)

    # ---- Spatial stats: channel mean on the (idle) MXU, channel max on VPU/XLU ----
    ch_mean = jnp.dot(jnp.full((1, C), 1.0 / C, jnp.float32), y,
                      preferred_element_type=jnp.float32)      # (1, HW)
    ch_max = jnp.max(y, axis=0, keepdims=True)                 # (1, HW)

    # ---- Flat zero-framed stats buffer: [base zeros | HW stats | base zeros] ----
    # Only the tiny frame is re-zeroed each step; the interior is overwritten.
    frame = jnp.zeros((2, base), jnp.float32)
    pad_ref[:, pl.ds(0, base)] = frame
    pad_ref[:, pl.ds(base + HW, base)] = frame
    pad_ref[0:1, pl.ds(base, HW)] = ch_mean
    pad_ref[1:2, pl.ds(base, HW)] = ch_max

    # ---- kxk "same" conv (2 -> 1 channels, no bias) on the flat buffer ----
    # Output pixel i needs stat at flat index i + dy*W + dx.  Row overflow is
    # absorbed by the zero frame; column overflow by the per-dx masks in cm_ref.
    acc = jnp.zeros((1, HW), jnp.float32)
    for dx in range(ksize):
        part = jnp.zeros((1, HW), jnp.float32)
        for c in range(2):
            for dy in range(ksize):
                wv = w2_ref[c * ksize * ksize + dy * ksize + dx]    # SMEM scalar
                part = part + wv * pad_ref[c:c + 1, pl.ds(dy * width + dx, HW)]
        if dx == padw:
            acc = acc + part                      # centre column: always valid
        else:
            acc = acc + part * cm_ref[dx:dx + 1, :]
    sa = jax.nn.sigmoid(acc)                                   # (1, HW)

    # ---- Final write: out = y * sa from the VMEM y cache (lane-dense store) ----
    o_ref[0] = y_ref[...] * sa.astype(o_ref.dtype)


def cbam(x, ca_weight, ca_bias, sa_weight, *, kernel_size=7):
    """CBAM forward.

    x         : (B, C, H, W), float32 or bfloat16
    ca_weight : (C, C, 1, 1) or (C, C)    -- ChannelAttention fc (1x1 conv) weight
    ca_bias   : (C,)                      -- ChannelAttention fc bias
    sa_weight : (1, 2, k, k) or (2, k, k) -- SpatialAttention conv weight (no bias)
    """
    B, C, H, W = x.shape
    assert kernel_size in (3, 7), "kernel size must be 3 or 7"
    p = kernel_size // 2
    HW = H * W
    base = p * W + p
    flat_len = HW + 2 * base

    w1 = ca_weight.reshape(C, C).astype(jnp.float32)
    b1 = ca_bias.reshape(C, 1).astype(jnp.float32)
    w2 = sa_weight.reshape(2 * kernel_size * kernel_size).astype(jnp.float32)

    # Column-validity masks (one per kernel column dx) for the flat-indexed conv.
    col = jnp.arange(HW, dtype=jnp.int32) % W
    cm = jnp.stack(
        [((col >= p - dx) & (col < W + p - dx)).astype(jnp.float32)
         for dx in range(kernel_size)], axis=0)                      # (k, HW)

    x_flat = x.reshape(B, C, HW)            # lane axis = H*W (lane-dense)

    # --- honest per-step VMEM footprint (padding + f32 temporaries included) ---
    def rup(v, m):
        return -(-v // m) * m

    elem = jnp.dtype(x.dtype).itemsize
    cp, hwp = rup(C, 8), rup(HW, 128)
    io_block = cp * hwp * elem
    need = (
        4 * io_block                                  # double-buffered in + out blocks
        + cp * hwp * elem                             # y cache scratch
        + 2 * cp * hwp * 4                            # in-kernel f32 temporaries (xf, y)
        + 2 * (cp * rup(C, 128) + cp * 128) * 4       # w1 + b1 (double-buffered)
        + 2 * rup(kernel_size, 8) * hwp * 4           # column masks (double-buffered)
        + 8 * rup(flat_len, 128) * 4                  # flat stats scratch
        + (8 << 20)                                   # Mosaic internal scratch / headroom
    )
    try:
        vmem_cap = int(pltpu.get_tpu_info().vmem_capacity_bytes)
    except Exception:
        vmem_cap = 64 << 20                           # conservative (v7x per-core VMEM)
    vmem_limit = int(min(max(need, 32 << 20), vmem_cap - (8 << 20)))
    # TODO(synk): if need > vmem_limit, fall back to the H-tiled two-pass path.

    flops = B * (
        6 * C * HW                                    # pool + y + mean/max + final scale
        + 2 * C * C                                   # 1x1-conv matvec
        + 2 * 2 * kernel_size * kernel_size * HW      # spatial conv
    )
    cost = pl.CostEstimate(
        flops=flops,
        transcendentals=B * (C + HW),
        bytes_accessed=2 * B * C * HW * elem
        + (C * C + C + kernel_size * HW + 2 * kernel_size * kernel_size) * 4,
    )

    kernel = functools.partial(_cbam_kernel, width=W, ksize=kernel_size, padw=p)

    out_flat = pl.pallas_call(
        kernel,
        out_shape=jax.ShapeDtypeStruct((B, C, HW), x.dtype),
        grid_spec=pltpu.PrefetchScalarGridSpec(
            num_scalar_prefetch=0,
            grid=(B,),
            in_specs=[
                pl.BlockSpec((1, C, HW), lambda b: (b, 0, 0)),       # x: one batch / step
                pl.BlockSpec((C, C), lambda b: (0, 0)),              # fc weight (constant)
                pl.BlockSpec((C, 1), lambda b: (0, 0)),              # fc bias   (constant)
                pl.BlockSpec((kernel_size, HW), lambda b: (0, 0)),   # column masks
                pl.BlockSpec(memory_space=pltpu.MemorySpace.SMEM),   # kxk conv weights
            ],
            out_specs=pl.BlockSpec((1, C, HW), lambda b: (b, 0, 0)),
            scratch_shapes=[
                pltpu.VMEM((C, HW), x.dtype),                        # y = x*ca cache
                pltpu.VMEM((2, flat_len), jnp.float32),              # flat stats buffer
            ],
        ),
        compiler_params=pltpu.CompilerParams(
            dimension_semantics=("parallel",),
            vmem_limit_bytes=vmem_limit,
        ),
        cost_estimate=cost,
    )(x_flat, w1, b1, cm, w2)

    return out_flat.reshape(B, C, H, W)


def _cbam_reference(x, ca_weight, ca_bias, sa_weight, kernel_size):
    """Pure-JAX reference matching the PyTorch CBAM forward."""
    B, C, H, W = x.shape
    w1 = ca_weight.reshape(C, C)
    pooled = jnp.mean(x, axis=(2, 3))                              # (B, C)
    ca = jax.nn.sigmoid(pooled @ w1.T + ca_bias.reshape(1, C))     # (B, C)
    y = x * ca[:, :, None, None]
    st = jnp.concatenate(
        [jnp.mean(y, axis=1, keepdims=True), jnp.max(y, axis=1, keepdims=True)],
        axis=1,
    )                                                               # (B, 2, H, W)
    pad = kernel_size // 2
    logit = jax.lax.conv_general_dilated(
        st,
        sa_weight.reshape(1, 2, kernel_size, kernel_size),
        window_strides=(1, 1),
        padding=((pad, pad), (pad, pad)),
        dimension_numbers=("NCHW", "OIHW", "NCHW"),
    )                                                               # (B, 1, H, W)
    return y * jax.nn.sigmoid(logit)


if __name__ == "__main__":
    key = jax.random.PRNGKey(0)

    # ---- main test: k=7, square spatial, f32 and bf16 I/O ----
    B, C, H, W, K = 2, 4, 16, 16, 7
    kx, kw1, kb1, kw2, krest = jax.random.split(key, 5)
    x = jax.random.normal(kx, (B, C, H, W), dtype=jnp.float32)
    ca_w = jax.random.normal(kw1, (C, C, 1, 1), dtype=jnp.float32) * 0.1
    ca_b = jax.random.normal(kb1, (C,), dtype=jnp.float32) * 0.1
    sa_w = jax.random.normal(kw2, (1, 2, K, K), dtype=jnp.float32) * 0.1

    # f32 path.  Tolerance 2e-3: the channel-mean matmul is offloaded to the MXU,
    # which truncates f32 inputs to bf16 at default precision (use
    # Precision.HIGHEST there if exact f32 stats are ever required).
    out = jax.block_until_ready(cbam(x, ca_w, ca_b, sa_w, kernel_size=K))
    ref = _cbam_reference(x, ca_w, ca_b, sa_w, K)
    assert out.shape == (B, C, H, W)
    assert jnp.allclose(out, ref, atol=2e-3, rtol=2e-3), "f32 mismatch vs reference"

    # bf16 I/O path (halves HBM traffic; accumulation stays f32 in-kernel).
    x_bf = x.astype(jnp.bfloat16)
    out_bf = jax.block_until_ready(cbam(x_bf, ca_w, ca_b, sa_w, kernel_size=K))
    ref_bf = _cbam_reference(x_bf.astype(jnp.float32), ca_w, ca_b, sa_w, K)
    assert out_bf.dtype == jnp.bfloat16
    assert jnp.allclose(out_bf.astype(jnp.float32), ref_bf, atol=3e-2, rtol=3e-2), \
        "bf16 mismatch vs reference"

    # ---- secondary test: k=3, B=1, non-square spatial, H*W not a 128 multiple ----
    B2, C2, H2, W2, K2 = 1, 6, 8, 12, 3
    k2x, k2w1, k2b1, k2w2 = jax.random.split(krest, 4)
    x2 = jax.random.normal(k2x, (B2, C2, H2, W2), dtype=jnp.float32)
    ca_w2 = jax.random.normal(k2w1, (C2, C2, 1, 1), dtype=jnp.float32) * 0.1
    ca_b2 = jax.random.normal(k2b1, (C2,), dtype=jnp.float32) * 0.1
    sa_w2 = jax.random.normal(k2w2, (1, 2, K2, K2), dtype=jnp.float32) * 0.1
    out2 = jax.block_until_ready(cbam(x2, ca_w2, ca_b2, sa_w2, kernel_size=K2))
    ref2 = _cbam_reference(x2, ca_w2, ca_b2, sa_w2, K2)
    assert jnp.allclose(out2, ref2, atol=2e-3, rtol=2e-3), "k=3 mismatch vs reference"

    print("KERNEL_OK")
</pallas_src>

<mosaic_0001>
module attributes {stable_mosaic.version = 11 : i64} {
  func.func @_cbam_kernel(%arg0: i32, %arg1: memref<1x4x256xf32, #tpu.memory_space<vmem>>, %arg2: memref<4x4xf32, #tpu.memory_space<vmem>>, %arg3: memref<4x1xf32, #tpu.memory_space<vmem>>, %arg4: memref<7x256xf32, #tpu.memory_space<vmem>>, %arg5: memref<98xf32, #tpu.memory_space<smem>>, %arg6: memref<1x4x256xf32, #tpu.memory_space<vmem>>, %arg7: memref<4x256xf32, #tpu.memory_space<vmem>>, %arg8: memref<2x358xf32, #tpu.memory_space<vmem>>) attributes {dimension_semantics = [#tpu.dimension_semantics<parallel>], iteration_bounds = array<i64: 2>, scalar_prefetch = 0 : i64, scratch_operands = 2 : i64, tpu.core_type = #tpu.core_type<tc>, window_params = [{transform_indices = @transform_0, window_bounds = array<i64: 1, 4, 256>}, {pipeline_mode = #tpu.pipeline_mode<synchronous>, transform_indices = @transform_1, window_bounds = array<i64: 4, 4>}, {pipeline_mode = #tpu.pipeline_mode<synchronous>, transform_indices = @transform_2, window_bounds = array<i64: 4, 1>}, {pipeline_mode = #tpu.pipeline_mode<synchronous>, transform_indices = @transform_3, window_bounds = array<i64: 7, 256>}, {transform_indices = @transform_4, window_bounds = array<i64: 98>}, {transform_indices = @transform_5, window_bounds = array<i64: 1, 4, 256>}]} {
    %c0 = arith.constant 0 : index
    %c0_0 = arith.constant 0 : index
    %c0_1 = arith.constant 0 : index
    %0 = vector.load %arg1[%c0, %c0_0, %c0_1] : memref<1x4x256xf32, #tpu.memory_space<vmem>>, vector<1x4x256xf32>
    %1 = vector.shape_cast %0 : vector<1x4x256xf32> to vector<4x256xf32>
    %cst = arith.constant dense<0.000000e+00> : vector<4xf32>
    %2 = vector.multi_reduction <add>, %1, %cst [1] : vector<4x256xf32> to vector<4xf32>
    %3 = vector.shape_cast %2 : vector<4xf32> to vector<4x1xf32>
    %cst_2 = arith.constant 2.560000e+02 : f32
    %4 = vector.broadcast %cst_2 : f32 to vector<4x1xf32>
    %5 = arith.divf %3, %4 : vector<4x1xf32>
    %c0_3 = arith.constant 0 : index
    %c0_4 = arith.constant 0 : index
    %6 = vector.load %arg2[%c0_3, %c0_4] : memref<4x4xf32, #tpu.memory_space<vmem>>, vector<4x4xf32>
    %cst_5 = arith.constant dense<0.000000e+00> : vector<4x1xf32>
    %7 = tpu.matmul %6, %5, %cst_5 {dimension_numbers = #tpu.dot_dimension_numbers<[1], [0], [0], [1], [0, 0, 1, 1], [], []>} : vector<4x4xf32>, vector<4x1xf32>, vector<4x1xf32> -> vector<4x1xf32>
    %c0_6 = arith.constant 0 : index
    %c0_7 = arith.constant 0 : index
    %8 = vector.load %arg3[%c0_6, %c0_7] : memref<4x1xf32, #tpu.memory_space<vmem>>, vector<4x1xf32>
    %9 = arith.addf %7, %8 : vector<4x1xf32>
    %10 = arith.negf %9 : vector<4x1xf32>
    %11 = math.exp %10 : vector<4x1xf32>
    %cst_8 = arith.constant 1.000000e+00 : f32
    %12 = vector.broadcast %cst_8 : f32 to vector<4x1xf32>
    %13 = arith.addf %12, %11 : vector<4x1xf32>
    %14 = arith.divf %12, %13 : vector<4x1xf32>
    %15 = vector.broadcast %14 : vector<4x1xf32> to vector<4x256xf32>
    %16 = arith.mulf %1, %15 : vector<4x256xf32>
    %c0_9 = arith.constant 0 : index
    %c0_10 = arith.constant 0 : index
    %17 = vector.load %arg7[%c0_9, %c0_10] : memref<4x256xf32, #tpu.memory_space<vmem>>, vector<4x256xf32>
    tpu.vector_store %arg7[%c0_9, %c0_10], %16 {strides = array<i32>} : memref<4x256xf32, #tpu.memory_space<vmem>>, vector<4x256xf32>,
    %cst_11 = arith.constant 2.500000e-01 : f32
    %18 = vector.broadcast %cst_11 : f32 to vector<1x4xf32>
    %cst_12 = arith.constant dense<0.000000e+00> : vector<1x256xf32>
    %19 = tpu.matmul %18, %16, %cst_12 {dimension_numbers = #tpu.dot_dimension_numbers<[1], [0], [0], [1], [0, 0, 1, 1], [], []>} : vector<1x4xf32>, vector<4x256xf32>, vector<1x256xf32> -> vector<1x256xf32>
    %cst_13 = arith.constant dense<0xFF800000> : vector<256xf32>
    %20 = vector.multi_reduction <maximumf>, %16, %cst_13 [0] : vector<4x256xf32> to vector<256xf32>
    %21 = vector.shape_cast %20 : vector<256xf32> to vector<1x256xf32>
    %cst_14 = arith.constant 0.000000e+00 : f32
    %22 = vector.broadcast %cst_14 : f32 to vector<2x51xf32>
    %c0_15 = arith.constant 0 : index
    %c0_16 = arith.constant 0 : index
    %23 = vector.load %arg8[%c0_15, %c0_16] : memref<2x358xf32, #tpu.memory_space<vmem>>, vector<2x51xf32>
    tpu.vector_store %arg8[%c0_15, %c0_16], %22 {strides = array<i32>} : memref<2x358xf32, #tpu.memory_space<vmem>>, vector<2x51xf32>,
    %c0_17 = arith.constant 0 : index
    %c307 = arith.constant 307 : index
    %24 = vector.load %arg8[%c0_17, %c307] : memref<2x358xf32, #tpu.memory_space<vmem>>, vector<2x51xf32>
    tpu.vector_store %arg8[%c0_17, %c307], %22 {strides = array<i32>} : memref<2x358xf32, #tpu.memory_space<vmem>>, vector<2x51xf32>,
    %c0_18 = arith.constant 0 : index
    %c51 = arith.constant 51 : index
    %25 = vector.load %arg8[%c0_18, %c51] : memref<2x358xf32, #tpu.memory_space<vmem>>, vector<1x256xf32>
    tpu.vector_store %arg8[%c0_18, %c51], %19 {strides = array<i32>} : memref<2x358xf32, #tpu.memory_space<vmem>>, vector<1x256xf32>,
    %c1 = arith.constant 1 : index
    %c51_19 = arith.constant 51 : index
    %26 = vector.load %arg8[%c1, %c51_19] : memref<2x358xf32, #tpu.memory_space<vmem>>, vector<1x256xf32>
    tpu.vector_store %arg8[%c1, %c51_19], %21 {strides = array<i32>} : memref<2x358xf32, #tpu.memory_space<vmem>>, vector<1x256xf32>,
    %cst_20 = arith.constant 0.000000e+00 : f32
    %27 = vector.broadcast %cst_20 : f32 to vector<1x256xf32>
    %cst_21 = arith.constant 0.000000e+00 : f32
    %28 = vector.broadcast %cst_21 : f32 to vector<1x256xf32>
    %c0_22 = arith.constant 0 : index
    %29 = memref.load %arg5[%c0_22] : memref<98xf32, #tpu.memory_space<smem>>
    %c0_23 = arith.constant 0 : index
    %c0_24 = arith.constant 0 : index
    %30 = vector.load %arg8[%c0_23, %c0_24] : memref<2x358xf32, #tpu.memory_space<vmem>>, vector<1x256xf32>
    %31 = vector.broadcast %29 : f32 to vector<1x256xf32>
    %32 = arith.mulf %31, %30 : vector<1x256xf32>
    %33 = arith.addf %28, %32 : vector<1x256xf32>
    %c7 = arith.constant 7 : index
    %34 = memref.load %arg5[%c7] : memref<98xf32, #tpu.memory_space<smem>>
    %c0_25 = arith.constant 0 : index
    %c16 = arith.constant 16 : index
    %35 = vector.load %arg8[%c0_25, %c16] : memref<2x358xf32, #tpu.memory_space<vmem>>, vector<1x256xf32>
    %36 = vector.broadcast %34 : f32 to vector<1x256xf32>
    %37 = arith.mulf %36, %35 : vector<1x256xf32>
    %38 = arith.addf %33, %37 : vector<1x256xf32>
    %c14 = arith.constant 14 : index
    %39 = memref.load %arg5[%c14] : memref<98xf32, #tpu.memory_space<smem>>
    %c0_26 = arith.constant 0 : index
    %c32 = arith.constant 32 : index
    %40 = vector.load %arg8[%c0_26, %c32] : memref<2x358xf32, #tpu.memory_space<vmem>>, vector<1x256xf32>
    %41 = vector.broadcast %39 : f32 to vector<1x256xf32>
    %42 = arith.mulf %41, %40 : vector<1x256xf32>
    %43 = arith.addf %38, %42 : vector<1x256xf32>
    %c21 = arith.constant 21 : index
    %44 = memref.load %arg5[%c21] : memref<98xf32, #tpu.memory_space<smem>>
    %c0_27 = arith.constant 0 : index
    %c48 = arith.constant 48 : index
    %45 = vector.load %arg8[%c0_27, %c48] : memref<2x358xf32, #tpu.memory_space<vmem>>, vector<1x256xf32>
    %46 = vector.broadcast %44 : f32 to vector<1x256xf32>
    %47 = arith.mulf %46, %45 : vector<1x256xf32>
    %48 = arith.addf %43, %47 : vector<1x256xf32>
    %c28 = arith.constant 28 : index
    %49 = memref.load %arg5[%c28] : memref<98xf32, #tpu.memory_space<smem>>
    %c0_28 = arith.constant 0 : index
    %c64 = arith.constant 64 : index
    %50 = vector.load %arg8[%c0_28, %c64] : memref<2x358xf32, #tpu.memory_space<vmem>>, vector<1x256xf32>
    %51 = vector.broadcast %49 : f32 to vector<1x256xf32>
    %52 = arith.mulf %51, %50 : vector<1x256xf32>
    %53 = arith.addf %48, %52 : vector<1x256xf32>
    %c35 = arith.constant 35 : index
    %54 = memref.load %arg5[%c35] : memref<98xf32, #tpu.memory_space<smem>>
    %c0_29 = arith.constant 0 : index
    %c80 = arith.constant 80 : index
    %55 = vector.load %arg8[%c0_29, %c80] : memref<2x358xf32, #tpu.memory_space<vmem>>, vector<1x256xf32>
    %56 = vector.broadcast %54 : f32 to vector<1x256xf32>
    %57 = arith.mulf %56, %55 : vector<1x256xf32>
    %58 = arith.addf %53, %57 : vector<1x256xf32>
    %c42 = arith.constant 42 : index
    %59 = memref.load %arg5[%c42] : memref<98xf32, #tpu.memory_space<smem>>
    %c0_30 = arith.constant 0 : index
    %c96 = arith.constant 96 : index
    %60 = vector.load %arg8[%c0_30, %c96] : memref<2x358xf32, #tpu.memory_space<vmem>>, vector<1x256xf32>
    %61 = vector.broadcast %59 : f32 to vector<1x256xf32>
    %62 = arith.mulf %61, %60 : vector<1x256xf32>
    %63 = arith.addf %58, %62 : vector<1x256xf32>
    %c49 = arith.constant 49 : index
    %64 = memref.load %arg5[%c49] : memref<98xf32, #tpu.memory_space<smem>>
    %c1_31 = arith.constant 1 : index
    %c0_32 = arith.constant 0 : index
    %65 = vector.load %arg8[%c1_31, %c0_32] : memref<2x358xf32, #tpu.memory_space<vmem>>, vector<1x256xf32>
    %66 = vector.broadcast %64 : f32 to vector<1x256xf32>
    %67 = arith.mulf %66, %65 : vector<1x256xf32>
    %68 = arith.addf %63, %67 : vector<1x256xf32>
    %c56 = arith.constant 56 : index
    %69 = memref.load %arg5[%c56] : memref<98xf32, #tpu.memory_space<smem>>
    %c1_33 = arith.constant 1 : index
    %c16_34 = arith.constant 16 : index
    %70 = vector.load %arg8[%c1_33, %c16_34] : memref<2x358xf32, #tpu.memory_space<vmem>>, vector<1x256xf32>
    %71 = vector.broadcast %69 : f32 to vector<1x256xf32>
    %72 = arith.mulf %71, %70 : vector<1x256xf32>
    %73 = arith.addf %68, %72 : vector<1x256xf32>
    %c63 = arith.constant 63 : index
    %74 = memref.load %arg5[%c63] : memref<98xf32, #tpu.memory_space<smem>>
    %c1_35 = arith.constant 1 : index
    %c32_36 = arith.constant 32 : index
    %75 = vector.load %arg8[%c1_35, %c32_36] : memref<2x358xf32, #tpu.memory_space<vmem>>, vector<1x256xf32>
    %76 = vector.broadcast %74 : f32 to vector<1x256xf32>
    %77 = arith.mulf %76, %75 : vector<1x256xf32>
    %78 = arith.addf %73, %77 : vector<1x256xf32>
    %c70 = arith.constant 70 : index
    %79 = memref.load %arg5[%c70] : memref<98xf32, #tpu.memory_space<smem>>
    %c1_37 = arith.constant 1 : index
    %c48_38 = arith.constant 48 : index
    %80 = vector.load %arg8[%c1_37, %c48_38] : memref<2x358xf32, #tpu.memory_space<vmem>>, vector<1x256xf32>
    %81 = vector.broadcast %79 : f32 to vector<1x256xf32>
    %82 = arith.mulf %81, %80 : vector<1x256xf32>
    %83 = arith.addf %78, %82 : vector<1x256xf32>
    %c77 = arith.constant 77 : index
    %84 = memref.load %arg5[%c77] : memref<98xf32, #tpu.memory_space<smem>>
    %c1_39 = arith.constant 1 : index
    %c64_40 = arith.constant 64 : index
    %85 = vector.load %arg8[%c1_39, %c64_40] : memref<2x358xf32, #tpu.memory_space<vmem>>, vector<1x256xf32>
    %86 = vector.broadcast %84 : f32 to vector<1x256xf32>
    %87 = arith.mulf %86, %85 : vector<1x256xf32>
    %88 = arith.addf %83, %87 : vector<1x256xf32>
    %c84 = arith.constant 84 : index
    %89 = memref.load %arg5[%c84] : memref<98xf32, #tpu.memory_space<smem>>
    %c1_41 = arith.constant 1 : index
    %c80_42 = arith.constant 80 : index
    %90 = vector.load %arg8[%c1_41, %c80_42] : memref<2x358xf32, #tpu.memory_space<vmem>>, vector<1x256xf32>
    %91 = vector.broadcast %89 : f32 to vector<1x256xf32>
    %92 = arith.mulf %91, %90 : vector<1x256xf32>
    %93 = arith.addf %88, %92 : vector<1x256xf32>
    %c91 = arith.constant 91 : index
    %94 = memref.load %arg5[%c91] : memref<98xf32, #tpu.memory_space<smem>>
    %c1_43 = arith.constant 1 : index
    %c96_44 = arith.constant 96 : index
    %95 = vector.load %arg8[%c1_43, %c96_44] : memref<2x358xf32, #tpu.memory_space<vmem>>, vector<1x256xf32>
    %96 = vector.broadcast %94 : f32 to vector<1x256xf32>
    %97 = arith.mulf %96, %95 : vector<1x256xf32>
    %98 = arith.addf %93, %97 : vector<1x256xf32>
    %c0_45 = arith.constant 0 : index
    %c0_46 = arith.constant 0 : index
    %99 = vector.load %arg4[%c0_45, %c0_46] : memref<7x256xf32, #tpu.memory_space<vmem>>, vector<1x256xf32>
    %100 = arith.mulf %98, %99 : vector<1x256xf32>
    %101 = arith.addf %27, %100 : vector<1x256xf32>
    %cst_47 = arith.constant 0.000000e+00 : f32
    %102 = vector.broadcast %cst_47 : f32 to vector<1x256xf32>
    %c1_48 = arith.constant 1 : index
    %103 = memref.load %arg5[%c1_48] : memref<98xf32, #tpu.memory_space<smem>>
    %c0_49 = arith.constant 0 : index
    %c1_50 = arith.constant 1 : index
    %104 = vector.load %arg8[%c0_49, %c1_50] : memref<2x358xf32, #tpu.memory_space<vmem>>, vector<1x256xf32>
    %105 = vector.broadcast %103 : f32 to vector<1x256xf32>
    %106 = arith.mulf %105, %104 : vector<1x256xf32>
    %107 = arith.addf %102, %106 : vector<1x256xf32>
    %c8 = arith.constant 8 : index
    %108 = memref.load %arg5[%c8] : memref<98xf32, #tpu.memory_space<smem>>
    %c0_51 = arith.constant 0 : index
    %c17 = arith.constant 17 : index
    %109 = vector.load %arg8[%c0_51, %c17] : memref<2x358xf32, #tpu.memory_space<vmem>>, vector<1x256xf32>
    %110 = vector.broadcast %108 : f32 to vector<1x256xf32>
    %111 = arith.mulf %110, %109 : vector<1x256xf32>
    %112 = arith.addf %107, %111 : vector<1x256xf32>
    %c15 = arith.constant 15 : index
    %113 = memref.load %arg5[%c15] : memref<98xf32, #tpu.memory_space<smem>>
    %c0_52 = arith.constant 0 : index
    %c33 = arith.constant 33 : index
    %114 = vector.load %arg8[%c0_52, %c33] : memref<2x358xf32, #tpu.memory_space<vmem>>, vector<1x256xf32>
    %115 = vector.broadcast %113 : f32 to vector<1x256xf32>
    %116 = arith.mulf %115, %114 : vector<1x256xf32>
    %117 = arith.addf %112, %116 : vector<1x256xf32>
    %c22 = arith.constant 22 : index
    %118 = memref.load %arg5[%c22] : memref<98xf32, #tpu.memory_space<smem>>
    %c0_53 = arith.constant 0 : index
    %c49_54 = arith.constant 49 : index
    %119 = vector.load %arg8[%c0_53, %c49_54] : memref<2x358xf32, #tpu.memory_space<vmem>>, vector<1x256xf32>
    %120 = vector.broadcast %118 : f32 to vector<1x256xf32>
    %121 = arith.mulf %120, %119 : vector<1x256xf32>
    %122 = arith.addf %117, %121 : vector<1x256xf32>
    %c29 = arith.constant 29 : index
    %123 = memref.load %arg5[%c29] : memref<98xf32, #tpu.memory_space<smem>>
    %c0_55 = arith.constant 0 : index
    %c65 = arith.constant 65 : index
    %124 = vector.load %arg8[%c0_55, %c65] : memref<2x358xf32, #tpu.memory_space<vmem>>, vector<1x256xf32>
    %125 = vector.broadcast %123 : f32 to vector<1x256xf32>
    %126 = arith.mulf %125, %124 : vector<1x256xf32>
    %127 = arith.addf %122, %126 : vector<1x256xf32>
    %c36 = arith.constant 36 : index
    %128 = memref.load %arg5[%c36] : memref<98xf32, #tpu.memory_space<smem>>
    %c0_56 = arith.constant 0 : index
    %c81 = arith.constant 81 : index
    %129 = vector.load %arg8[%c0_56, %c81] : memref<2x358xf32, #tpu.memory_space<vmem>>, vector<1x256xf32>
    %130 = vector.broadcast %128 : f32 to vector<1x256xf32>
    %131 = arith.mulf %130, %129 : vector<1x256xf32>
    %132 = arith.addf %127, %131 : vector<1x256xf32>
    %c43 = arith.constant 43 : index
    %133 = memref.load %arg5[%c43] : memref<98xf32, #tpu.memory_space<smem>>
    %c0_57 = arith.constant 0 : index
    %c97 = arith.constant 97 : index
    %134 = vector.load %arg8[%c0_57, %c97] : memref<2x358xf32, #tpu.memory_space<vmem>>, vector<1x256xf32>
    %135 = vector.broadcast %133 : f32 to vector<1x256xf32>
    %136 = arith.mulf %135, %134 : vector<1x256xf32>
    %137 = arith.addf %132, %136 : vector<1x256xf32>
    %c50 = arith.constant 50 : index
    %138 = memref.load %arg5[%c50] : memref<98xf32, #tpu.memory_space<smem>>
    %c1_58 = arith.constant 1 : index
    %c1_59 = arith.constant 1 : index
    %139 = vector.load %arg8[%c1_58, %c1_59] : memref<2x358xf32, #tpu.memory_space<vmem>>, vector<1x256xf32>
    %140 = vector.broadcast %138 : f32 to vector<1x256xf32>
    %141 = arith.mulf %140, %139 : vector<1x256xf32>
    %142 = arith.addf %137, %141 : vector<1x256xf32>
    %c57 = arith.constant 57 : index
    %143 = memref.load %arg5[%c57] : memref<98xf32, #tpu.memory_space<smem>>
    %c1_60 = arith.constant 1 : index
    %c17_61 = arith.constant 17 : index
    %144 = vector.load %arg8[%c1_60, %c17_61] : memref<2x358xf32, #tpu.memory_space<vmem>>, vector<1x256xf32>
    %145 = vector.broadcast %143 : f32 to vector<1x256xf32>
    %146 = arith.mulf %145, %144 : vector<1x256xf32>
    %147 = arith.addf %142, %146 : vector<1x256xf32>
    %c64_62 = arith.constant 64 : index
    %148 = memref.load %arg5[%c64_62] : memref<98xf32, #tpu.memory_space<smem>>
    %c1_63 = arith.constant 1 : index
    %c33_64 = arith.constant 33 : index
    %149 = vector.load %arg8[%c1_63, %c33_64] : memref<2x358xf32, #tpu.memory_space<vmem>>, vector<1x256xf32>
    %150 = vector.broadcast %148 : f32 to vector<1x256xf32>
    %151 = arith.mulf %150, %149 : vector<1x256xf32>
    %152 = arith.addf %147, %151 : vector<1x256xf32>
    %c71 = arith.constant 71 : index
    %153 = memref.load %arg5[%c71] : memref<98xf32, #tpu.memory_space<smem>>
    %c1_65 = arith.constant 1 : index
    %c49_66 = arith.constant 49 : index
    %154 = vector.load %arg8[%c1_65, %c49_66] : memref<2x358xf32, #tpu.memory_space<vmem>>, vector<1x256xf32>
    %155 = vector.broadcast %153 : f32 to vector<1x256xf32>
    %156 = arith.mulf %155, %154 : vector<1x256xf32>
    %157 = arith.addf %152, %156 : vector<1x256xf32>
    %c78 = arith.constant 78 : index
    %158 = memref.load %arg5[%c78] : memref<98xf32, #tpu.memory_space<smem>>
    %c1_67 = arith.constant 1 : index
    %c65_68 = arith.constant 65 : index
    %159 = vector.load %arg8[%c1_67, %c65_68] : memref<2x358xf32, #tpu.memory_space<vmem>>, vector<1x256xf32>
    %160 = vector.broadcast %158 : f32 to vector<1x256xf32>
    %161 = arith.mulf %160, %159 : vector<1x256xf32>
    %162 = arith.addf %157, %161 : vector<1x256xf32>
    %c85 = arith.constant 85 : index
    %163 = memref.load %arg5[%c85] : memref<98xf32, #tpu.memory_space<smem>>
    %c1_69 = arith.constant 1 : index
    %c81_70 = arith.constant 81 : index
    %164 = vector.load %arg8[%c1_69, %c81_70] : memref<2x358xf32, #tpu.memory_space<vmem>>, vector<1x256xf32>
    %165 = vector.broadcast %163 : f32 to vector<1x256xf32>
    %166 = arith.mulf %165, %164 : vector<1x256xf32>
    %167 = arith.addf %162, %166 : vector<1x256xf32>
    %c92 = arith.constant 92 : index
    %168 = memref.load %arg5[%c92] : memref<98xf32, #tpu.memory_space<smem>>
    %c1_71 = arith.constant 1 : index
    %c97_72 = arith.constant 97 : index
    %169 = vector.load %arg8[%c1_71, %c97_72] : memref<2x358xf32, #tpu.memory_space<vmem>>, vector<1x256xf32>
    %170 = vector.broadcast %168 : f32 to vector<1x256xf32>
    %171 = arith.mulf %170, %169 : vector<1x256xf32>
    %172 = arith.addf %167, %171 : vector<1x256xf32>
    %c1_73 = arith.constant 1 : index
    %c0_74 = arith.constant 0 : index
    %173 = vector.load %arg4[%c1_73, %c0_74] : memref<7x256xf32, #tpu.memory_space<vmem>>, vector<1x256xf32>
    %174 = arith.mulf %172, %173 : vector<1x256xf32>
    %175 = arith.addf %101, %174 : vector<1x256xf32>
    %cst_75 = arith.constant 0.000000e+00 : f32
    %176 = vector.broadcast %cst_75 : f32 to vector<1x256xf32>
    %c2 = arith.constant 2 : index
    %177 = memref.load %arg5[%c2] : memref<98xf32, #tpu.memory_space<smem>>
    %c0_76 = arith.constant 0 : index
    %c2_77 = arith.constant 2 : index
    %178 = vector.load %arg8[%c0_76, %c2_77] : memref<2x358xf32, #tpu.memory_space<vmem>>, vector<1x256xf32>
    %179 = vector.broadcast %177 : f32 to vector<1x256xf32>
    %180 = arith.mulf %179, %178 : vector<1x256xf32>
    %181 = arith.addf %176, %180 : vector<1x256xf32>
    %c9 = arith.constant 9 : index
    %182 = memref.load %arg5[%c9] : memref<98xf32, #tpu.memory_space<smem>>
    %c0_78 = arith.constant 0 : index
    %c18 = arith.constant 18 : index
    %183 = vector.load %arg8[%c0_78, %c18] : memref<2x358xf32, #tpu.memory_space<vmem>>, vector<1x256xf32>
    %184 = vector.broadcast %182 : f32 to vector<1x256xf32>
    %185 = arith.mulf %184, %183 : vector<1x256xf32>
    %186 = arith.addf %181, %185 : vector<1x256xf32>
    %c16_79 = arith.constant 16 : index
    %187 = memref.load %arg5[%c16_79] : memref<98xf32, #tpu.memory_space<smem>>
    %c0_80 = arith.constant 0 : index
    %c34 = arith.constant 34 : index
    %188 = vector.load %arg8[%c0_80, %c34] : memref<2x358xf32, #tpu.memory_space<vmem>>, vector<1x256xf32>
    %189 = vector.broadcast %187 : f32 to vector<1x256xf32>
    %190 = arith.mulf %189, %188 : vector<1x256xf32>
    %191 = arith.addf %186, %190 : vector<1x256xf32>
    %c23 = arith.constant 23 : index
    %192 = memref.load %arg5[%c23] : memref<98xf32, #tpu.memory_space<smem>>
    %c0_81 = arith.constant 0 : index
    %c50_82 = arith.constant 50 : index
    %193 = vector.load %arg8[%c0_81, %c50_82] : memref<2x358xf32, #tpu.memory_space<vmem>>, vector<1x256xf32>
    %194 = vector.broadcast %192 : f32 to vector<1x256xf32>
    %195 = arith.mulf %194, %193 : vector<1x256xf32>
    %196 = arith.addf %191, %195 : vector<1x256xf32>
    %c30 = arith.constant 30 : index
    %197 = memref.load %arg5[%c30] : memref<98xf32, #tpu.memory_space<smem>>
    %c0_83 = arith.constant 0 : index
    %c66 = arith.constant 66 : index
    %198 = vector.load %arg8[%c0_83, %c66] : memref<2x358xf32, #tpu.memory_space<vmem>>, vector<1x256xf32>
    %199 = vector.broadcast %197 : f32 to vector<1x256xf32>
    %200 = arith.mulf %199, %198 : vector<1x256xf32>
    %201 = arith.addf %196, %200 : vector<1x256xf32>
    %c37 = arith.constant 37 : index
    %202 = memref.load %arg5[%c37] : memref<98xf32, #tpu.memory_space<smem>>
    %c0_84 = arith.constant 0 : index
    %c82 = arith.constant 82 : index
    %203 = vector.load %arg8[%c0_84, %c82] : memref<2x358xf32, #tpu.memory_space<vmem>>, vector<1x256xf32>
    %204 = vector.broadcast %202 : f32 to vector<1x256xf32>
    %205 = arith.mulf %204, %203 : vector<1x256xf32>
    %206 = arith.addf %201, %205 : vector<1x256xf32>
    %c44 = arith.constant 44 : index
    %207 = memref.load %arg5[%c44] : memref<98xf32, #tpu.memory_space<smem>>
    %c0_85 = arith.constant 0 : index
    %c98 = arith.constant 98 : index
    %208 = vector.load %arg8[%c0_85, %c98] : memref<2x358xf32, #tpu.memory_space<vmem>>, vector<1x256xf32>
    %209 = vector.broadcast %207 : f32 to vector<1x256xf32>
    %210 = arith.mulf %209, %208 : vector<1x256xf32>
    %211 = arith.addf %206, %210 : vector<1x256xf32>
    %c51_86 = arith.constant 51 : index
    %212 = memref.load %arg5[%c51_86] : memref<98xf32, #tpu.memory_space<smem>>
    %c1_87 = arith.constant 1 : index
    %c2_88 = arith.constant 2 : index
    %213 = vector.load %arg8[%c1_87, %c2_88] : memref<2x358xf32, #tpu.memory_space<vmem>>, vector<1x256xf32>
    %214 = vector.broadcast %212 : f32 to vector<1x256xf32>
    %215 = arith.mulf %214, %213 : vector<1x256xf32>
    %216 = arith.addf %211, %215 : vector<1x256xf32>
    %c58 = arith.constant 58 : index
    %217 = memref.load %arg5[%c58] : memref<98xf32, #tpu.memory_space<smem>>
    %c1_89 = arith.constant 1 : index
    %c18_90 = arith.constant 18 : index
    %218 = vector.load %arg8[%c1_89, %c18_90] : memref<2x358xf32, #tpu.memory_space<vmem>>, vector<1x256xf32>
    %219 = vector.broadcast %217 : f32 to vector<1x256xf32>
    %220 = arith.mulf %219, %218 : vector<1x256xf32>
    %221 = arith.addf %216, %220 : vector<1x256xf32>
    %c65_91 = arith.constant 65 : index
    %222 = memref.load %arg5[%c65_91] : memref<98xf32, #tpu.memory_space<smem>>
    %c1_92 = arith.constant 1 : index
    %c34_93 = arith.constant 34 : index
    %223 = vector.load %arg8[%c1_92, %c34_93] : memref<2x358xf32, #tpu.memory_space<vmem>>, vector<1x256xf32>
    %224 = vector.broadcast %222 : f32 to vector<1x256xf32>
    %225 = arith.mulf %224, %223 : vector<1x256xf32>
    %226 = arith.addf %221, %225 : vector<1x256xf32>
    %c72 = arith.constant 72 : index
    %227 = memref.load %arg5[%c72] : memref<98xf32, #tpu.memory_space<smem>>
    %c1_94 = arith.constant 1 : index
    %c50_95 = arith.constant 50 : index
    %228 = vector.load %arg8[%c1_94, %c50_95] : memref<2x358xf32, #tpu.memory_space<vmem>>, vector<1x256xf32>
    %229 = vector.broadcast %227 : f32 to vector<1x256xf32>
    %230 = arith.mulf %229, %228 : vector<1x256xf32>
    %231 = arith.addf %226, %230 : vector<1x256xf32>
    %c79 = arith.constant 79 : index
    %232 = memref.load %arg5[%c79] : memref<98xf32, #tpu.memory_space<smem>>
    %c1_96 = arith.constant 1 : index
    %c66_97 = arith.constant 66 : index
    %233 = vector.load %arg8[%c1_96, %c66_97] : memref<2x358xf32, #tpu.memory_space<vmem>>, vector<1x256xf32>
    %234 = vector.broadcast %232 : f32 to vector<1x256xf32>
    %235 = arith.mulf %234, %233 : vector<1x256xf32>
    %236 = arith.addf %231, %235 : vector<1x256xf32>
    %c86 = arith.constant 86 : index
    %237 = memref.load %arg5[%c86] : memref<98xf32, #tpu.memory_space<smem>>
    %c1_98 = arith.constant 1 : index
    %c82_99 = arith.constant 82 : index
    %238 = vector.load %arg8[%c1_98, %c82_99] : memref<2x358xf32, #tpu.memory_space<vmem>>, vector<1x256xf32>
    %239 = vector.broadcast %237 : f32 to vector<1x256xf32>
    %240 = arith.mulf %239, %238 : vector<1x256xf32>
    %241 = arith.addf %236, %240 : vector<1x256xf32>
    %c93 = arith.constant 93 : index
    %242 = memref.load %arg5[%c93] : memref<98xf32, #tpu.memory_space<smem>>
    %c1_100 = arith.constant 1 : index
    %c98_101 = arith.constant 98 : index
    %243 = vector.load %arg8[%c1_100, %c98_101] : memref<2x358xf32, #tpu.memory_space<vmem>>, vector<1x256xf32>
    %244 = vector.broadcast %242 : f32 to vector<1x256xf32>
    %245 = arith.mulf %244, %243 : vector<1x256xf32>
    %246 = arith.addf %241, %245 : vector<1x256xf32>
    %c2_102 = arith.constant 2 : index
    %c0_103 = arith.constant 0 : index
    %247 = vector.load %arg4[%c2_102, %c0_103] : memref<7x256xf32, #tpu.memory_space<vmem>>, vector<1x256xf32>
    %248 = arith.mulf %246, %247 : vector<1x256xf32>
    %249 = arith.addf %175, %248 : vector<1x256xf32>
    %cst_104 = arith.constant 0.000000e+00 : f32
    %250 = vector.broadcast %cst_104 : f32 to vector<1x256xf32>
    %c3 = arith.constant 3 : index
    %251 = memref.load %arg5[%c3] : memref<98xf32, #tpu.memory_space<smem>>
    %c0_105 = arith.constant 0 : index
    %c3_106 = arith.constant 3 : index
    %252 = vector.load %arg8[%c0_105, %c3_106] : memref<2x358xf32, #tpu.memory_space<vmem>>, vector<1x256xf32>
    %253 = vector.broadcast %251 : f32 to vector<1x256xf32>
    %254 = arith.mulf %253, %252 : vector<1x256xf32>
    %255 = arith.addf %250, %254 : vector<1x256xf32>
    %c10 = arith.constant 10 : index
    %256 = memref.load %arg5[%c10] : memref<98xf32, #tpu.memory_space<smem>>
    %c0_107 = arith.constant 0 : index
    %c19 = arith.constant 19 : index
    %257 = vector.load %arg8[%c0_107, %c19] : memref<2x358xf32, #tpu.memory_space<vmem>>, vector<1x256xf32>
    %258 = vector.broadcast %256 : f32 to vector<1x256xf32>
    %259 = arith.mulf %258, %257 : vector<1x256xf32>
    %260 = arith.addf %255, %259 : vector<1x256xf32>
    %c17_108 = arith.constant 17 : index
    %261 = memref.load %arg5[%c17_108] : memref<98xf32, #tpu.memory_space<smem>>
    %c0_109 = arith.constant 0 : index
    %c35_110 = arith.constant 35 : index
    %262 = vector.load %arg8[%c0_109, %c35_110] : memref<2x358xf32, #tpu.memory_space<vmem>>, vector<1x256xf32>
    %263 = vector.broadcast %261 : f32 to vector<1x256xf32>
    %264 = arith.mulf %263, %262 : vector<1x256xf32>
    %265 = arith.addf %260, %264 : vector<1x256xf32>
    %c24 = arith.constant 24 : index
    %266 = memref.load %arg5[%c24] : memref<98xf32, #tpu.memory_space<smem>>
    %c0_111 = arith.constant 0 : index
    %c51_112 = arith.constant 51 : index
    %267 = vector.load %arg8[%c0_111, %c51_112] : memref<2x358xf32, #tpu.memory_space<vmem>>, vector<1x256xf32>
    %268 = vector.broadcast %266 : f32 to vector<1x256xf32>
    %269 = arith.mulf %268, %267 : vector<1x256xf32>
    %270 = arith.addf %265, %269 : vector<1x256xf32>
    %c31 = arith.constant 31 : index
    %271 = memref.load %arg5[%c31] : memref<98xf32, #tpu.memory_space<smem>>
    %c0_113 = arith.constant 0 : index
    %c67 = arith.constant 67 : index
    %272 = vector.load %arg8[%c0_113, %c67] : memref<2x358xf32, #tpu.memory_space<vmem>>, vector<1x256xf32>
    %273 = vector.broadcast %271 : f32 to vector<1x256xf32>
    %274 = arith.mulf %273, %272 : vector<1x256xf32>
    %275 = arith.addf %270, %274 : vector<1x256xf32>
    %c38 = arith.constant 38 : index
    %276 = memref.load %arg5[%c38] : memref<98xf32, #tpu.memory_space<smem>>
    %c0_114 = arith.constant 0 : index
    %c83 = arith.constant 83 : index
    %277 = vector.load %arg8[%c0_114, %c83] : memref<2x358xf32, #tpu.memory_space<vmem>>, vector<1x256xf32>
    %278 = vector.broadcast %276 : f32 to vector<1x256xf32>
    %279 = arith.mulf %278, %277 : vector<1x256xf32>
    %280 = arith.addf %275, %279 : vector<1x256xf32>
    %c45 = arith.constant 45 : index
    %281 = memref.load %arg5[%c45] : memref<98xf32, #tpu.memory_space<smem>>
    %c0_115 = arith.constant 0 : index
    %c99 = arith.constant 99 : index
    %282 = vector.load %arg8[%c0_115, %c99] : memref<2x358xf32, #tpu.memory_space<vmem>>, vector<1x256xf32>
    %283 = vector.broadcast %281 : f32 to vector<1x256xf32>
    %284 = arith.mulf %283, %282 : vector<1x256xf32>
    %285 = arith.addf %280, %284 : vector<1x256xf32>
    %c52 = arith.constant 52 : index
    %286 = memref.load %arg5[%c52] : memref<98xf32, #tpu.memory_space<smem>>
    %c1_116 = arith.constant 1 : index
    %c3_117 = arith.constant 3 : index
    %287 = vector.load %arg8[%c1_116, %c3_117] : memref<2x358xf32, #tpu.memory_space<vmem>>, vector<1x256xf32>
    %288 = vector.broadcast %286 : f32 to vector<1x256xf32>
    %289 = arith.mulf %288, %287 : vector<1x256xf32>
    %290 = arith.addf %285, %289 : vector<1x256xf32>
    %c59 = arith.constant 59 : index
    %291 = memref.load %arg5[%c59] : memref<98xf32, #tpu.memory_space<smem>>
    %c1_118 = arith.constant 1 : index
    %c19_119 = arith.constant 19 : index
    %292 = vector.load %arg8[%c1_118, %c19_119] : memref<2x358xf32, #tpu.memory_space<vmem>>, vector<1x256xf32>
    %293 = vector.broadcast %291 : f32 to vector<1x256xf32>
    %294 = arith.mulf %293, %292 : vector<1x256xf32>
    %295 = arith.addf %290, %294 : vector<1x256xf32>
    %c66_120 = arith.constant 66 : index
    %296 = memref.load %arg5[%c66_120] : memref<98xf32, #tpu.memory_space<smem>>
    %c1_121 = arith.constant 1 : index
    %c35_122 = arith.constant 35 : index
    %297 = vector.load %arg8[%c1_121, %c35_122] : memref<2x358xf32, #tpu.memory_space<vmem>>, vector<1x256xf32>
    %298 = vector.broadcast %296 : f32 to vector<1x256xf32>
    %299 = arith.mulf %298, %297 : vector<1x256xf32>
    %300 = arith.addf %295, %299 : vector<1x256xf32>
    %c73 = arith.constant 73 : index
    %301 = memref.load %arg5[%c73] : memref<98xf32, #tpu.memory_space<smem>>
    %c1_123 = arith.constant 1 : index
    %c51_124 = arith.constant 51 : index
    %302 = vector.load %arg8[%c1_123, %c51_124] : memref<2x358xf32, #tpu.memory_space<vmem>>, vector<1x256xf32>
    %303 = vector.broadcast %301 : f32 to vector<1x256xf32>
    %304 = arith.mulf %303, %302 : vector<1x256xf32>
    %305 = arith.addf %300, %304 : vector<1x256xf32>
    %c80_125 = arith.constant 80 : index
    %306 = memref.load %arg5[%c80_125] : memref<98xf32, #tpu.memory_space<smem>>
    %c1_126 = arith.constant 1 : index
    %c67_127 = arith.constant 67 : index
    %307 = vector.load %arg8[%c1_126, %c67_127] : memref<2x358xf32, #tpu.memory_space<vmem>>, vector<1x256xf32>
    %308 = vector.broadcast %306 : f32 to vector<1x256xf32>
    %309 = arith.mulf %308, %307 : vector<1x256xf32>
    %310 = arith.addf %305, %309 : vector<1x256xf32>
    %c87 = arith.constant 87 : index
    %311 = memref.load %arg5[%c87] : memref<98xf32, #tpu.memory_space<smem>>
    %c1_128 = arith.constant 1 : index
    %c83_129 = arith.constant 83 : index
    %312 = vector.load %arg8[%c1_128, %c83_129] : memref<2x358xf32, #tpu.memory_space<vmem>>, vector<1x256xf32>
    %313 = vector.broadcast %311 : f32 to vector<1x256xf32>
    %314 = arith.mulf %313, %312 : vector<1x256xf32>
    %315 = arith.addf %310, %314 : vector<1x256xf32>
    %c94 = arith.constant 94 : index
    %316 = memref.load %arg5[%c94] : memref<98xf32, #tpu.memory_space<smem>>
    %c1_130 = arith.constant 1 : index
    %c99_131 = arith.constant 99 : index
    %317 = vector.load %arg8[%c1_130, %c99_131] : memref<2x358xf32, #tpu.memory_space<vmem>>, vector<1x256xf32>
    %318 = vector.broadcast %316 : f32 to vector<1x256xf32>
    %319 = arith.mulf %318, %317 : vector<1x256xf32>
    %320 = arith.addf %315, %319 : vector<1x256xf32>
    %321 = arith.addf %249, %320 : vector<1x256xf32>
    %cst_132 = arith.constant 0.000000e+00 : f32
    %322 = vector.broadcast %cst_132 : f32 to vector<1x256xf32>
    %c4 = arith.constant 4 : index
    %323 = memref.load %arg5[%c4] : memref<98xf32, #tpu.memory_space<smem>>
    %c0_133 = arith.constant 0 : index
    %c4_134 = arith.constant 4 : index
    %324 = vector.load %arg8[%c0_133, %c4_134] : memref<2x358xf32, #tpu.memory_space<vmem>>, vector<1x256xf32>
    %325 = vector.broadcast %323 : f32 to vector<1x256xf32>
    %326 = arith.mulf %325, %324 : vector<1x256xf32>
    %327 = arith.addf %322, %326 : vector<1x256xf32>
    %c11 = arith.constant 11 : index
    %328 = memref.load %arg5[%c11] : memref<98xf32, #tpu.memory_space<smem>>
    %c0_135 = arith.constant 0 : index
    %c20 = arith.constant 20 : index
    %329 = vector.load %arg8[%c0_135, %c20] : memref<2x358xf32, #tpu.memory_space<vmem>>, vector<1x256xf32>
    %330 = vector.broadcast %328 : f32 to vector<1x256xf32>
    %331 = arith.mulf %330, %329 : vector<1x256xf32>
    %332 = arith.addf %327, %331 : vector<1x256xf32>
    %c18_136 = arith.constant 18 : index
    %333 = memref.load %arg5[%c18_136] : memref<98xf32, #tpu.memory_space<smem>>
    %c0_137 = arith.constant 0 : index
    %c36_138 = arith.constant 36 : index
    %334 = vector.load %arg8[%c0_137, %c36_138] : memref<2x358xf32, #tpu.memory_space<vmem>>, vector<1x256xf32>
    %335 = vector.broadcast %333 : f32 to vector<1x256xf32>
    %336 = arith.mulf %335, %334 : vector<1x256xf32>
    %337 = arith.addf %332, %336 : vector<1x256xf32>
    %c25 = arith.constant 25 : index
    %338 = memref.load %arg5[%c25] : memref<98xf32, #tpu.memory_space<smem>>
    %c0_139 = arith.constant 0 : index
    %c52_140 = arith.constant 52 : index
    %339 = vector.load %arg8[%c0_139, %c52_140] : memref<2x358xf32, #tpu.memory_space<vmem>>, vector<1x256xf32>
    %340 = vector.broadcast %338 : f32 to vector<1x256xf32>
    %341 = arith.mulf %340, %339 : vector<1x256xf32>
    %342 = arith.addf %337, %341 : vector<1x256xf32>
    %c32_141 = arith.constant 32 : index
    %343 = memref.load %arg5[%c32_141] : memref<98xf32, #tpu.memory_space<smem>>
    %c0_142 = arith.constant 0 : index
    %c68 = arith.constant 68 : index
    %344 = vector.load %arg8[%c0_142, %c68] : memref<2x358xf32, #tpu.memory_space<vmem>>, vector<1x256xf32>
    %345 = vector.broadcast %343 : f32 to vector<1x256xf32>
    %346 = arith.mulf %345, %344 : vector<1x256xf32>
    %347 = arith.addf %342, %346 : vector<1x256xf32>
    %c39 = arith.constant 39 : index
    %348 = memref.load %arg5[%c39] : memref<98xf32, #tpu.memory_space<smem>>
    %c0_143 = arith.constant 0 : index
    %c84_144 = arith.constant 84 : index
    %349 = vector.load %arg8[%c0_143, %c84_144] : memref<2x358xf32, #tpu.memory_space<vmem>>, vector<1x256xf32>
    %350 = vector.broadcast %348 : f32 to vector<1x256xf32>
    %351 = arith.mulf %350, %349 : vector<1x256xf32>
    %352 = arith.addf %347, %351 : vector<1x256xf32>
    %c46 = arith.constant 46 : index
    %353 = memref.load %arg5[%c46] : memref<98xf32, #tpu.memory_space<smem>>
    %c0_145 = arith.constant 0 : index
    %c100 = arith.constant 100 : index
    %354 = vector.load %arg8[%c0_145, %c100] : memref<2x358xf32, #tpu.memory_space<vmem>>, vector<1x256xf32>
    %355 = vector.broadcast %353 : f32 to vector<1x256xf32>
    %356 = arith.mulf %355, %354 : vector<1x256xf32>
    %357 = arith.addf %352, %356 : vector<1x256xf32>
    %c53 = arith.constant 53 : index
    %358 = memref.load %arg5[%c53] : memref<98xf32, #tpu.memory_space<smem>>
    %c1_146 = arith.constant 1 : index
    %c4_147 = arith.constant 4 : index
    %359 = vector.load %arg8[%c1_146, %c4_147] : memref<2x358xf32, #tpu.memory_space<vmem>>, vector<1x256xf32>
    %360 = vector.broadcast %358 : f32 to vector<1x256xf32>
    %361 = arith.mulf %360, %359 : vector<1x256xf32>
    %362 = arith.addf %357, %361 : vector<1x256xf32>
    %c60 = arith.constant 60 : index
    %363 = memref.load %arg5[%c60] : memref<98xf32, #tpu.memory_space<smem>>
    %c1_148 = arith.constant 1 : index
    %c20_149 = arith.constant 20 : index
    %364 = vector.load %arg8[%c1_148, %c20_149] : memref<2x358xf32, #tpu.memory_space<vmem>>, vector<1x256xf32>
    %365 = vector.broadcast %363 : f32 to vector<1x256xf32>
    %366 = arith.mulf %365, %364 : vector<1x256xf32>
    %367 = arith.addf %362, %366 : vector<1x256xf32>
    %c67_150 = arith.constant 67 : index
    %368 = memref.load %arg5[%c67_150] : memref<98xf32, #tpu.memory_space<smem>>
    %c1_151 = arith.constant 1 : index
    %c36_152 = arith.constant 36 : index
    %369 = vector.load %arg8[%c1_151, %c36_152] : memref<2x358xf32, #tpu.memory_space<vmem>>, vector<1x256xf32>
    %370 = vector.broadcast %368 : f32 to vector<1x256xf32>
    %371 = arith.mulf %370, %369 : vector<1x256xf32>
    %372 = arith.addf %367, %371 : vector<1x256xf32>
    %c74 = arith.constant 74 : index
    %373 = memref.load %arg5[%c74] : memref<98xf32, #tpu.memory_space<smem>>
    %c1_153 = arith.constant 1 : index
    %c52_154 = arith.constant 52 : index
    %374 = vector.load %arg8[%c1_153, %c52_154] : memref<2x358xf32, #tpu.memory_space<vmem>>, vector<1x256xf32>
    %375 = vector.broadcast %373 : f32 to vector<1x256xf32>
    %376 = arith.mulf %375, %374 : vector<1x256xf32>
    %377 = arith.addf %372, %376 : vector<1x256xf32>
    %c81_155 = arith.constant 81 : index
    %378 = memref.load %arg5[%c81_155] : memref<98xf32, #tpu.memory_space<smem>>
    %c1_156 = arith.constant 1 : index
    %c68_157 = arith.constant 68 : index
    %379 = vector.load %arg8[%c1_156, %c68_157] : memref<2x358xf32, #tpu.memory_space<vmem>>, vector<1x256xf32>
    %380 = vector.broadcast %378 : f32 to vector<1x256xf32>
    %381 = arith.mulf %380, %379 : vector<1x256xf32>
    %382 = arith.addf %377, %381 : vector<1x256xf32>
    %c88 = arith.constant 88 : index
    %383 = memref.load %arg5[%c88] : memref<98xf32, #tpu.memory_space<smem>>
    %c1_158 = arith.constant 1 : index
    %c84_159 = arith.constant 84 : index
    %384 = vector.load %arg8[%c1_158, %c84_159] : memref<2x358xf32, #tpu.memory_space<vmem>>, vector<1x256xf32>
    %385 = vector.broadcast %383 : f32 to vector<1x256xf32>
    %386 = arith.mulf %385, %384 : vector<1x256xf32>
    %387 = arith.addf %382, %386 : vector<1x256xf32>
    %c95 = arith.constant 95 : index
    %388 = memref.load %arg5[%c95] : memref<98xf32, #tpu.memory_space<smem>>
    %c1_160 = arith.constant 1 : index
    %c100_161 = arith.constant 100 : index
    %389 = vector.load %arg8[%c1_160, %c100_161] : memref<2x358xf32, #tpu.memory_space<vmem>>, vector<1x256xf32>
    %390 = vector.broadcast %388 : f32 to vector<1x256xf32>
    %391 = arith.mulf %390, %389 : vector<1x256xf32>
    %392 = arith.addf %387, %391 : vector<1x256xf32>
    %c4_162 = arith.constant 4 : index
    %c0_163 = arith.constant 0 : index
    %393 = vector.load %arg4[%c4_162, %c0_163] : memref<7x256xf32, #tpu.memory_space<vmem>>, vector<1x256xf32>
    %394 = arith.mulf %392, %393 : vector<1x256xf32>
    %395 = arith.addf %321, %394 : vector<1x256xf32>
    %cst_164 = arith.constant 0.000000e+00 : f32
    %396 = vector.broadcast %cst_164 : f32 to vector<1x256xf32>
    %c5 = arith.constant 5 : index
    %397 = memref.load %arg5[%c5] : memref<98xf32, #tpu.memory_space<smem>>
    %c0_165 = arith.constant 0 : index
    %c5_166 = arith.constant 5 : index
    %398 = vector.load %arg8[%c0_165, %c5_166] : memref<2x358xf32, #tpu.memory_space<vmem>>, vector<1x256xf32>
    %399 = vector.broadcast %397 : f32 to vector<1x256xf32>
    %400 = arith.mulf %399, %398 : vector<1x256xf32>
    %401 = arith.addf %396, %400 : vector<1x256xf32>
    %c12 = arith.constant 12 : index
    %402 = memref.load %arg5[%c12] : memref<98xf32, #tpu.memory_space<smem>>
    %c0_167 = arith.constant 0 : index
    %c21_168 = arith.constant 21 : index
    %403 = vector.load %arg8[%c0_167, %c21_168] : memref<2x358xf32, #tpu.memory_space<vmem>>, vector<1x256xf32>
    %404 = vector.broadcast %402 : f32 to vector<1x256xf32>
    %405 = arith.mulf %404, %403 : vector<1x256xf32>
    %406 = arith.addf %401, %405 : vector<1x256xf32>
    %c19_169 = arith.constant 19 : index
    %407 = memref.load %arg5[%c19_169] : memref<98xf32, #tpu.memory_space<smem>>
    %c0_170 = arith.constant 0 : index
    %c37_171 = arith.constant 37 : index
    %408 = vector.load %arg8[%c0_170, %c37_171] : memref<2x358xf32, #tpu.memory_space<vmem>>, vector<1x256xf32>
    %409 = vector.broadcast %407 : f32 to vector<1x256xf32>
    %410 = arith.mulf %409, %408 : vector<1x256xf32>
    %411 = arith.addf %406, %410 : vector<1x256xf32>
    %c26 = arith.constant 26 : index
    %412 = memref.load %arg5[%c26] : memref<98xf32, #tpu.memory_space<smem>>
    %c0_172 = arith.constant 0 : index
    %c53_173 = arith.constant 53 : index
    %413 = vector.load %arg8[%c0_172, %c53_173] : memref<2x358xf32, #tpu.memory_space<vmem>>, vector<1x256xf32>
    %414 = vector.broadcast %412 : f32 to vector<1x256xf32>
    %415 = arith.mulf %414, %413 : vector<1x256xf32>
    %416 = arith.addf %411, %415 : vector<1x256xf32>
    %c33_174 = arith.constant 33 : index
    %417 = memref.load %arg5[%c33_174] : memref<98xf32, #tpu.memory_space<smem>>
    %c0_175 = arith.constant 0 : index
    %c69 = arith.constant 69 : index
    %418 = vector.load %arg8[%c0_175, %c69] : memref<2x358xf32, #tpu.memory_space<vmem>>, vector<1x256xf32>
    %419 = vector.broadcast %417 : f32 to vector<1x256xf32>
    %420 = arith.mulf %419, %418 : vector<1x256xf32>
    %421 = arith.addf %416, %420 : vector<1x256xf32>
    %c40 = arith.constant 40 : index
    %422 = memref.load %arg5[%c40] : memref<98xf32, #tpu.memory_space<smem>>
    %c0_176 = arith.constant 0 : index
    %c85_177 = arith.constant 85 : index
    %423 = vector.load %arg8[%c0_176, %c85_177] : memref<2x358xf32, #tpu.memory_space<vmem>>, vector<1x256xf32>
    %424 = vector.broadcast %422 : f32 to vector<1x256xf32>
    %425 = arith.mulf %424, %423 : vector<1x256xf32>
    %426 = arith.addf %421, %425 : vector<1x256xf32>
    %c47 = arith.constant 47 : index
    %427 = memref.load %arg5[%c47] : memref<98xf32, #tpu.memory_space<smem>>
    %c0_178 = arith.constant 0 : index
    %c101 = arith.constant 101 : index
    %428 = vector.load %arg8[%c0_178, %c101] : memref<2x358xf32, #tpu.memory_space<vmem>>, vector<1x256xf32>
    %429 = vector.broadcast %427 : f32 to vector<1x256xf32>
    %430 = arith.mulf %429, %428 : vector<1x256xf32>
    %431 = arith.addf %426, %430 : vector<1x256xf32>
    %c54 = arith.constant 54 : index
    %432 = memref.load %arg5[%c54] : memref<98xf32, #tpu.memory_space<smem>>
    %c1_179 = arith.constant 1 : index
    %c5_180 = arith.constant 5 : index
    %433 = vector.load %arg8[%c1_179, %c5_180] : memref<2x358xf32, #tpu.memory_space<vmem>>, vector<1x256xf32>
    %434 = vector.broadcast %432 : f32 to vector<1x256xf32>
    %435 = arith.mulf %434, %433 : vector<1x256xf32>
    %436 = arith.addf %431, %435 : vector<1x256xf32>
    %c61 = arith.constant 61 : index
    %437 = memref.load %arg5[%c61] : memref<98xf32, #tpu.memory_space<smem>>
    %c1_181 = arith.constant 1 : index
    %c21_182 = arith.constant 21 : index
    %438 = vector.load %arg8[%c1_181, %c21_182] : memref<2x358xf32, #tpu.memory_space<vmem>>, vector<1x256xf32>
    %439 = vector.broadcast %437 : f32 to vector<1x256xf32>
    %440 = arith.mulf %439, %438 : vector<1x256xf32>
    %441 = arith.addf %436, %440 : vector<1x256xf32>
    %c68_183 = arith.constant 68 : index
    %442 = memref.load %arg5[%c68_183] : memref<98xf32, #tpu.memory_space<smem>>
    %c1_184 = arith.constant 1 : index
    %c37_185 = arith.constant 37 : index
    %443 = vector.load %arg8[%c1_184, %c37_185] : memref<2x358xf32, #tpu.memory_space<vmem>>, vector<1x256xf32>
    %444 = vector.broadcast %442 : f32 to vector<1x256xf32>
    %445 = arith.mulf %444, %443 : vector<1x256xf32>
    %446 = arith.addf %441, %445 : vector<1x256xf32>
    %c75 = arith.constant 75 : index
    %447 = memref.load %arg5[%c75] : memref<98xf32, #tpu.memory_space<smem>>
    %c1_186 = arith.constant 1 : index
    %c53_187 = arith.constant 53 : index
    %448 = vector.load %arg8[%c1_186, %c53_187] : memref<2x358xf32, #tpu.memory_space<vmem>>, vector<1x256xf32>
    %449 = vector.broadcast %447 : f32 to vector<1x256xf32>
    %450 = arith.mulf %449, %448 : vector<1x256xf32>
    %451 = arith.addf %446, %450 : vector<1x256xf32>
    %c82_188 = arith.constant 82 : index
    %452 = memref.load %arg5[%c82_188] : memref<98xf32, #tpu.memory_space<smem>>
    %c1_189 = arith.constant 1 : index
    %c69_190 = arith.constant 69 : index
    %453 = vector.load %arg8[%c1_189, %c69_190] : memref<2x358xf32, #tpu.memory_space<vmem>>, vector<1x256xf32>
    %454 = vector.broadcast %452 : f32 to vector<1x256xf32>
    %455 = arith.mulf %454, %453 : vector<1x256xf32>
    %456 = arith.addf %451, %455 : vector<1x256xf32>
    %c89 = arith.constant 89 : index
    %457 = memref.load %arg5[%c89] : memref<98xf32, #tpu.memory_space<smem>>
    %c1_191 = arith.constant 1 : index
    %c85_192 = arith.constant 85 : index
    %458 = vector.load %arg8[%c1_191, %c85_192] : memref<2x358xf32, #tpu.memory_space<vmem>>, vector<1x256xf32>
    %459 = vector.broadcast %457 : f32 to vector<1x256xf32>
    %460 = arith.mulf %459, %458 : vector<1x256xf32>
    %461 = arith.addf %456, %460 : vector<1x256xf32>
    %c96_193 = arith.constant 96 : index
    %462 = memref.load %arg5[%c96_193] : memref<98xf32, #tpu.memory_space<smem>>
    %c1_194 = arith.constant 1 : index
    %c101_195 = arith.constant 101 : index
    %463 = vector.load %arg8[%c1_194, %c101_195] : memref<2x358xf32, #tpu.memory_space<vmem>>, vector<1x256xf32>
    %464 = vector.broadcast %462 : f32 to vector<1x256xf32>
    %465 = arith.mulf %464, %463 : vector<1x256xf32>
    %466 = arith.addf %461, %465 : vector<1x256xf32>
    %c5_196 = arith.constant 5 : index
    %c0_197 = arith.constant 0 : index
    %467 = vector.load %arg4[%c5_196, %c0_197] : memref<7x256xf32, #tpu.memory_space<vmem>>, vector<1x256xf32>
    %468 = arith.mulf %466, %467 : vector<1x256xf32>
    %469 = arith.addf %395, %468 : vector<1x256xf32>
    %cst_198 = arith.constant 0.000000e+00 : f32
    %470 = vector.broadcast %cst_198 : f32 to vector<1x256xf32>
    %c6 = arith.constant 6 : index
    %471 = memref.load %arg5[%c6] : memref<98xf32, #tpu.memory_space<smem>>
    %c0_199 = arith.constant 0 : index
    %c6_200 = arith.constant 6 : index
    %472 = vector.load %arg8[%c0_199, %c6_200] : memref<2x358xf32, #tpu.memory_space<vmem>>, vector<1x256xf32>
    %473 = vector.broadcast %471 : f32 to vector<1x256xf32>
    %474 = arith.mulf %473, %472 : vector<1x256xf32>
    %475 = arith.addf %470, %474 : vector<1x256xf32>
    %c13 = arith.constant 13 : index
    %476 = memref.load %arg5[%c13] : memref<98xf32, #tpu.memory_space<smem>>
    %c0_201 = arith.constant 0 : index
    %c22_202 = arith.constant 22 : index
    %477 = vector.load %arg8[%c0_201, %c22_202] : memref<2x358xf32, #tpu.memory_space<vmem>>, vector<1x256xf32>
    %478 = vector.broadcast %476 : f32 to vector<1x256xf32>
    %479 = arith.mulf %478, %477 : vector<1x256xf32>
    %480 = arith.addf %475, %479 : vector<1x256xf32>
    %c20_203 = arith.constant 20 : index
    %481 = memref.load %arg5[%c20_203] : memref<98xf32, #tpu.memory_space<smem>>
    %c0_204 = arith.constant 0 : index
    %c38_205 = arith.constant 38 : index
    %482 = vector.load %arg8[%c0_204, %c38_205] : memref<2x358xf32, #tpu.memory_space<vmem>>, vector<1x256xf32>
    %483 = vector.broadcast %481 : f32 to vector<1x256xf32>
    %484 = arith.mulf %483, %482 : vector<1x256xf32>
    %485 = arith.addf %480, %484 : vector<1x256xf32>
    %c27 = arith.constant 27 : index
    %486 = memref.load %arg5[%c27] : memref<98xf32, #tpu.memory_space<smem>>
    %c0_206 = arith.constant 0 : index
    %c54_207 = arith.constant 54 : index
    %487 = vector.load %arg8[%c0_206, %c54_207] : memref<2x358xf32, #tpu.memory_space<vmem>>, vector<1x256xf32>
    %488 = vector.broadcast %486 : f32 to vector<1x256xf32>
    %489 = arith.mulf %488, %487 : vector<1x256xf32>
    %490 = arith.addf %485, %489 : vector<1x256xf32>
    %c34_208 = arith.constant 34 : index
    %491 = memref.load %arg5[%c34_208] : memref<98xf32, #tpu.memory_space<smem>>
    %c0_209 = arith.constant 0 : index
    %c70_210 = arith.constant 70 : index
    %492 = vector.load %arg8[%c0_209, %c70_210] : memref<2x358xf32, #tpu.memory_space<vmem>>, vector<1x256xf32>
    %493 = vector.broadcast %491 : f32 to vector<1x256xf32>
    %494 = arith.mulf %493, %492 : vector<1x256xf32>
    %495 = arith.addf %490, %494 : vector<1x256xf32>
    %c41 = arith.constant 41 : index
    %496 = memref.load %arg5[%c41] : memref<98xf32, #tpu.memory_space<smem>>
    %c0_211 = arith.constant 0 : index
    %c86_212 = arith.constant 86 : index
    %497 = vector.load %arg8[%c0_211, %c86_212] : memref<2x358xf32, #tpu.memory_space<vmem>>, vector<1x256xf32>
    %498 = vector.broadcast %496 : f32 to vector<1x256xf32>
    %499 = arith.mulf %498, %497 : vector<1x256xf32>
    %500 = arith.addf %495, %499 : vector<1x256xf32>
    %c48_213 = arith.constant 48 : index
    %501 = memref.load %arg5[%c48_213] : memref<98xf32, #tpu.memory_space<smem>>
    %c0_214 = arith.constant 0 : index
    %c102 = arith.constant 102 : index
    %502 = vector.load %arg8[%c0_214, %c102] : memref<2x358xf32, #tpu.memory_space<vmem>>, vector<1x256xf32>
    %503 = vector.broadcast %501 : f32 to vector<1x256xf32>
    %504 = arith.mulf %503, %502 : vector<1x256xf32>
    %505 = arith.addf %500, %504 : vector<1x256xf32>
    %c55 = arith.constant 55 : index
    %506 = memref.load %arg5[%c55] : memref<98xf32, #tpu.memory_space<smem>>
    %c1_215 = arith.constant 1 : index
    %c6_216 = arith.constant 6 : index
    %507 = vector.load %arg8[%c1_215, %c6_216] : memref<2x358xf32, #tpu.memory_space<vmem>>, vector<1x256xf32>
    %508 = vector.broadcast %506 : f32 to vector<1x256xf32>
    %509 = arith.mulf %508, %507 : vector<1x256xf32>
    %510 = arith.addf %505, %509 : vector<1x256xf32>
    %c62 = arith.constant 62 : index
    %511 = memref.load %arg5[%c62] : memref<98xf32, #tpu.memory_space<smem>>
    %c1_217 = arith.constant 1 : index
    %c22_218 = arith.constant 22 : index
    %512 = vector.load %arg8[%c1_217, %c22_218] : memref<2x358xf32, #tpu.memory_space<vmem>>, vector<1x256xf32>
    %513 = vector.broadcast %511 : f32 to vector<1x256xf32>
    %514 = arith.mulf %513, %512 : vector<1x256xf32>
    %515 = arith.addf %510, %514 : vector<1x256xf32>
    %c69_219 = arith.constant 69 : index
    %516 = memref.load %arg5[%c69_219] : memref<98xf32, #tpu.memory_space<smem>>
    %c1_220 = arith.constant 1 : index
    %c38_221 = arith.constant 38 : index
    %517 = vector.load %arg8[%c1_220, %c38_221] : memref<2x358xf32, #tpu.memory_space<vmem>>, vector<1x256xf32>
    %518 = vector.broadcast %516 : f32 to vector<1x256xf32>
    %519 = arith.mulf %518, %517 : vector<1x256xf32>
    %520 = arith.addf %515, %519 : vector<1x256xf32>
    %c76 = arith.constant 76 : index
    %521 = memref.load %arg5[%c76] : memref<98xf32, #tpu.memory_space<smem>>
    %c1_222 = arith.constant 1 : index
    %c54_223 = arith.constant 54 : index
    %522 = vector.load %arg8[%c1_222, %c54_223] : memref<2x358xf32, #tpu.memory_space<vmem>>, vector<1x256xf32>
    %523 = vector.broadcast %521 : f32 to vector<1x256xf32>
    %524 = arith.mulf %523, %522 : vector<1x256xf32>
    %525 = arith.addf %520, %524 : vector<1x256xf32>
    %c83_224 = arith.constant 83 : index
    %526 = memref.load %arg5[%c83_224] : memref<98xf32, #tpu.memory_space<smem>>
    %c1_225 = arith.constant 1 : index
    %c70_226 = arith.constant 70 : index
    %527 = vector.load %arg8[%c1_225, %c70_226] : memref<2x358xf32, #tpu.memory_space<vmem>>, vector<1x256xf32>
    %528 = vector.broadcast %526 : f32 to vector<1x256xf32>
    %529 = arith.mulf %528, %527 : vector<1x256xf32>
    %530 = arith.addf %525, %529 : vector<1x256xf32>
    %c90 = arith.constant 90 : index
    %531 = memref.load %arg5[%c90] : memref<98xf32, #tpu.memory_space<smem>>
    %c1_227 = arith.constant 1 : index
    %c86_228 = arith.constant 86 : index
    %532 = vector.load %arg8[%c1_227, %c86_228] : memref<2x358xf32, #tpu.memory_space<vmem>>, vector<1x256xf32>
    %533 = vector.broadcast %531 : f32 to vector<1x256xf32>
    %534 = arith.mulf %533, %532 : vector<1x256xf32>
    %535 = arith.addf %530, %534 : vector<1x256xf32>
    %c97_229 = arith.constant 97 : index
    %536 = memref.load %arg5[%c97_229] : memref<98xf32, #tpu.memory_space<smem>>
    %c1_230 = arith.constant 1 : index
    %c102_231 = arith.constant 102 : index
    %537 = vector.load %arg8[%c1_230, %c102_231] : memref<2x358xf32, #tpu.memory_space<vmem>>, vector<1x256xf32>
    %538 = vector.broadcast %536 : f32 to vector<1x256xf32>
    %539 = arith.mulf %538, %537 : vector<1x256xf32>
    %540 = arith.addf %535, %539 : vector<1x256xf32>
    %c6_232 = arith.constant 6 : index
    %c0_233 = arith.constant 0 : index
    %541 = vector.load %arg4[%c6_232, %c0_233] : memref<7x256xf32, #tpu.memory_space<vmem>>, vector<1x256xf32>
    %542 = arith.mulf %540, %541 : vector<1x256xf32>
    %543 = arith.addf %469, %542 : vector<1x256xf32>
    %544 = arith.negf %543 : vector<1x256xf32>
    %545 = math.exp %544 : vector<1x256xf32>
    %cst_234 = arith.constant 1.000000e+00 : f32
    %546 = vector.broadcast %cst_234 : f32 to vector<1x256xf32>
    %547 = arith.addf %546, %545 : vector<1x256xf32>
    %548 = arith.divf %546, %547 : vector<1x256xf32>
    %c0_235 = arith.constant 0 : index
    %c0_236 = arith.constant 0 : index
    %549 = vector.load %arg7[%c0_235, %c0_236] : memref<4x256xf32, #tpu.memory_space<vmem>>, vector<4x256xf32>
    %550 = vector.broadcast %548 : vector<1x256xf32> to vector<4x256xf32>
    %551 = arith.mulf %549, %550 : vector<4x256xf32>
    %c0_237 = arith.constant 0 : index
    %c0_238 = arith.constant 0 : index
    %c0_239 = arith.constant 0 : index
    %552 = vector.load %arg6[%c0_237, %c0_238, %c0_239] : memref<1x4x256xf32, #tpu.memory_space<vmem>>, vector<1x4x256xf32>
    %553 = vector.shape_cast %552 : vector<1x4x256xf32> to vector<4x256xf32>
    %554 = vector.shape_cast %551 : vector<4x256xf32> to vector<1x4x256xf32>
    tpu.vector_store %arg6[%c0_237, %c0_238, %c0_239], %554 {strides = array<i32>} : memref<1x4x256xf32, #tpu.memory_space<vmem>>, vector<1x4x256xf32>,
    return
  }
  func.func @transform_0(%arg0: i32) -> (i32, i32, i32) {
    %c0_i32 = arith.constant 0 : i32
    %c0_i32_0 = arith.constant 0 : i32
    %c0_i32_1 = arith.constant 0 : i32
    return %arg0, %c0_i32, %c0_i32_0 : i32, i32, i32
  }
  func.func @transform_1(%arg0: i32) -> (i32, i32) {
    %c0_i32 = arith.constant 0 : i32
    %c0_i32_0 = arith.constant 0 : i32
    %c0_i32_1 = arith.constant 0 : i32
    return %c0_i32, %c0_i32_0 : i32, i32
  }
  func.func @transform_2(%arg0: i32) -> (i32, i32) {
    %c0_i32 = arith.constant 0 : i32
    %c0_i32_0 = arith.constant 0 : i32
    %c0_i32_1 = arith.constant 0 : i32
    return %c0_i32, %c0_i32_0 : i32, i32
  }
  func.func @transform_3(%arg0: i32) -> (i32, i32) {
    %c0_i32 = arith.constant 0 : i32
    %c0_i32_0 = arith.constant 0 : i32
    %c0_i32_1 = arith.constant 0 : i32
    return %c0_i32, %c0_i32_0 : i32, i32
  }
  func.func @transform_4(%arg0: i32) -> i32 {
    %c0_i32 = arith.constant 0 : i32
    %c0_i32_0 = arith.constant 0 : i32
    return %c0_i32 : i32
  }
  func.func @transform_5(%arg0: i32) -> (i32, i32, i32) {
    %c0_i32 = arith.constant 0 : i32
    %c0_i32_0 = arith.constant 0 : i32
    %c0_i32_1 = arith.constant 0 : i32
    return %arg0, %c0_i32, %c0_i32_0 : i32, i32, i32
  }
}

</mosaic_0001>

<bundles_post_ra>
// kernel: tpu_custom_call.1
= control target key start
LH: loop header
LB: loop body
LE: loop exit
PB: predicated region body
PF: predicated region fallthrough
CT: control target
= control target key end

     0   :  { %10 = vsyncpa [#allocation5], 0  ;;  %s2953_s0 = inlined_call_operand.hbm [shape: f32[2,4,256], index: 0, kind: input, shape index: {}]   ;;  %s2954_s1 = inlined_call_operand.hbm [shape: f32[4,4], index: 1, kind: input, shape index: {}]   ;;  %s2955_s2 = inlined_call_operand.vmem [shape: f32[4,1], index: 2, kind: input, shape index: {}]   ;;  %s2956_s3 = inlined_call_operand.vmem [shape: f32[7,256], index: 3, kind: input, shape index: {}]   ;;  %s2957_s4 = inlined_call_operand.vmem [shape: f32[98], index: 4, kind: input, shape index: {}]   ;;  %s2958_s5 = inlined_call_operand.hbm [shape: f32[2,4,256], index: 5, kind: output, shape index: {}]  }
   0x1   :  { %12 = vsyncpa [#allocation5 + $0x1], 0 }
   0x2   :  { %13 = vsyncpa [#allocation9], 0 }
   0x3   :  { %14 = vsyncpa [#allocation7], 0 }
   0x4   :  { %15 = vsyncpa [#allocation6], 0 }
   0x5   :  { %17 = vsyncpa [#allocation6 + $0x1], 0  ;;  %s2108_s18 = smov 0   ;;  %s2110_s19 = smov 0  }
   0x6   :  { %s2112_s20 = smov 0   ;;  %s2114_s21 = smov 0  }
   0x7 LB: > { %s2129_s22 = sadd.s32 4294967295, %s2048_s21   ;;  %s1663_s23 = sadd.s32 4294967294, %s2048_s21   ;;  %s2048_s21 = sphi %s2114_s21, %s3027_s21   ;;  %s2044_s20 = sphi %s2112_s20, %s3026_s20   ;;  %s2040_s19 = sphi %s2110_s19, %s3025_s19   ;;  %s2036_s18 = sphi %s2108_s18, %s3024_s18  }
   0x8   : > { %p43_p0 = scmp.ne.s32.totalorder %s2040_s19, %s2036_s18  ;;  %p2959_p1 = scmp.eq.s32.totalorder %s2129_s22, 0 }
   0x9   : > { %p157_p3 = scmp.eq.s32.totalorder %s1663_s23, 1  ;;  %p1664_p5 = scmp.ge.s32.totalorder %s2048_s21, 1 }
   0xa   : > { %p2138_p4 = por %p2959_p1, %p43_p0  ;;  %p164_p7 = scmp.lt.s32.totalorder %s2048_s21, 3 }
   0xb   : > { %p2143_p6 = por %p157_p3, %p43_p0  ;;  %s2050_s27 = smov [#allocation8]  }
   0xc   : > { %s2978_s24 = scalar_select %p2138_p4, 1, 0 }
   0xd   : > { %s2979_s25 = scalar_select %p2143_p6, 1, 0 }
   0xe   : > { %p2148_p8 = pnand %p1664_p5, %p164_p7  ;;  %s177_s28 = sshll.u32 %s2050_s27, 4  ;;  %s178_s28 = int_to_ptr.vmem [resolvable:$true] %s177_s28 }
   0xf   : > { %s194_s6 = sshll.u32 %s2957_s4, 4  ;;  %s2167_s8 = sadd.s32 1, %s2048_s21   ;;  %s2158_s6 = int_to_ptr.vmem [resolvable:$true] %s194_s6 }
  0x10   : > { %s2980_s26 = scalar_select %p2148_p8, 1, 0 }
  0x11   : > { %p1811_p10 = pneg %p2148_p8  ;;  %s27_s9 = ssub.s32 %s2048_s21, %s2167_s8 }
  0x12   : > { %s1901_s12 = scalar_lea.hbm %s2954_s1, 64 }
  0x13   : > { %p2162_p11 = pnand %p1811_p10, %p2959_p1  ;;  %p1902_p12 = scmp.ne.s32.totalorder %s2954_s1, %s1901_s12 }
  0x14   : > { %p1908_p5 = scmp.lt.u32.totalorder %s1901_s12, %s2954_s1 }
  0x15   : > { %p1903_p13 = pneg %p2162_p11 }
  0x17   : > { %p1904_p0 = pnand %p1903_p13, %p1902_p12 }
  0x19   : > { %p1905_p3 = pneg %p1904_p0 }
  0x1b   : > { %p1910_p7 = pnand %p1908_p5, %p1905_p3 }
  0x1d   : > { %1913 = shalt.err (!%p1910_p7)
}
  0x1e   : > { %s1914_s17 = scalar_lea.vmem %s178_s28, 64  ;;  %p1922_p2 = scmp.lt.s32.totalorder %s178_s28, %s178_s28 }
  0x1f   : > { %p1915_p10 = scmp.ne.s32.totalorder %s178_s28, %s1914_s17  ;;  %p1923_p6 = scmp.lt.s32.totalorder %s1914_s17, %s1914_s17 }
  0x21   : > { %p1917_p9 = pnand %p1915_p10, %p1903_p13  ;;  %p1924_p4 = por %p1923_p6, %p1922_p2 }
  0x23   : > { %p1918_p1 = pneg %p1917_p9 }
  0x25   : > { %p1925_p8 = pnand %p1924_p4, %p1918_p1 }
  0x27   : > { %1928 = shalt.err (!%p1925_p8)
}
  0x28   : > { %1814 = dma.hbm_to_vmem [thread:$0]  (!%p2162_p11), %s2954_s1, 64, %s178_s28, [#allocation9]  }
  0x29   : > { %s1929_s29 = scalar_lea.vmem %s2158_s6, 16  ;;  %p1937_p2 = scmp.lt.s32.totalorder %s2158_s6, %s2158_s6 }
  0x2a   : > { %p1930_p12 = scmp.ne.s32.totalorder %s2158_s6, %s1929_s29  ;;  %p1938_p1 = scmp.lt.s32.totalorder %s1929_s29, %s1929_s29 }
  0x2c   : > { %p1932_p9 = pnand %p1930_p12, %p1903_p13  ;;  %p1939_p4 = por %p1938_p1, %p1937_p2 }
  0x2e   : > { %p1933_p0 = pneg %p1932_p9 }
  0x30   : > { %p1940_p6 = pnand %p1939_p4, %p1933_p0 }
  0x32   : > { %1943 = shalt.err (!%p1940_p6)
}
  0x33   : > { %s2051_s30 = smov [#allocation10]   ;;  %p28_p8 = scmp.eq.s32.totalorder %s27_s9, 0 }
  0x34   : > { %1817 = dma.vmem_to_smem (!%p2162_p11), %s2158_s6, 16, %s2051_s30, [#allocation7]  }
  0x35   : > { %s30_s28 = sadd.s32 1, %s2044_s20  ;;  %p37_p13 = scmp.ne.s32.totalorder %s2044_s20, %s2040_s19 }
  0x36   : > { %p38_p3 = scmp.eq.s32.totalorder %s2048_s21, 0  ;;  %p2982_p7 = scmp.eq.s32.totalorder %s2129_s22, 1 }
  0x37   : > { %s2211_s10 = scalar_select %p28_p8, %s2044_s20, %s30_s28  }
  0x38   : > { %p39_p5 = por %p38_p3, %p37_p13  ;;  %p2215_p10 = por %p2982_p7, %p37_p13 }
  0x39   : > { %p1828_p12 = scmp.lt.s32.totalorder %s2048_s21, 2  ;;  %s205_s11 = sand.u32 1, %s2044_s20  }
  0x3a   : > { %s1668_s12 = sshll.u32 %s205_s11, 3  ;;  %s1790_s13 = sshll.u32 %s2048_s21, 7 }
  0x3b   : > { %s2225_s6 = scalar_lea.hbm %s2953_s0, %s1790_s13  ;;  %s209_s9 = scalar_lea.vmem [#allocation4], %s1668_s12 }
  0x3c   : > { %s217_s16 = sshll.u32 %s209_s9, 4  ;;  %p2229_p11 = pnand %p1828_p12, %p39_p5  ;;  %s2227_s16 = int_to_ptr.vmem [resolvable:$true] %s217_s16 }
  0x3d   : > { %s206_s23 = scalar_lea.sflag [#allocation5], %s205_s11  ;;  %s1944_s27 = scalar_lea.hbm %s2225_s6, 128 }
  0x3e   : > { %p1945_p9 = scmp.ne.s32.totalorder %s2225_s6, %s1944_s27  ;;  %p1946_p0 = pneg %p2229_p11 }
  0x3f   : > { %s1949_s28 = scalar_lea.hbm %s2953_s0, 256  ;;  %p1950_p4 = scmp.lt.u32.totalorder %s2225_s6, %s2953_s0 }
  0x40   : > { %p1947_p2 = pnand %p1946_p0, %p1945_p9  ;;  %p1951_p6 = scmp.lt.u32.totalorder %s1949_s28, %s1944_s27 }
  0x41   : > { %p1953_p13 = scmp.lt.u32.totalorder %s1944_s27, %s2225_s6 }
  0x42   : > { %p1948_p1 = pneg %p1947_p2  ;;  %p1952_p8 = por %p1951_p6, %p1950_p4 }
  0x44   : > { %p1954_p3 = por %p1953_p13, %p1952_p8 }
  0x46   : > { %p1955_p5 = pnand %p1954_p3, %p1948_p1 }
  0x48   : > { %1958 = shalt.err (!%p1955_p5)
}
  0x49   : > { %s1959_s11 = scalar_lea.vmem %s2227_s16, 128  ;;  %s2052_s14 = smov [#allocation4]  }
  0x4a   : > { %p1960_p7 = scmp.ne.s32.totalorder %s2227_s16, %s1959_s11  ;;  %s1964_s15 = sshll.u32 %s2052_s14, 4  ;;  %s1965_s15 = int_to_ptr.vmem [resolvable:$false] %s1964_s15 }
  0x4b   : > { %s1966_s9 = scalar_lea.vmem %s1965_s15, 256  ;;  %p1967_p2 = scmp.lt.s32.totalorder %s2227_s16, %s1965_s15 }
  0x4c   : > { %p1962_p12 = pnand %p1960_p7, %p1946_p0  ;;  %p1968_p4 = scmp.lt.s32.totalorder %s1966_s9, %s1959_s11 }
  0x4e   : > { %p1963_p9 = pneg %p1962_p12  ;;  %p1969_p6 = por %p1968_p4, %p1967_p2 }
  0x50   : > { %p1970_p8 = pnand %p1969_p6, %p1963_p9 }
  0x52   : > { %1973 = shalt.err (!%p1970_p8)
}
  0x53   : > { %1821 = dma.hbm_to_vmem [thread:$0]  (!%p2229_p11), %s2225_s6, 128, %s2227_s16, %s206_s23  }
  0x54   : > { %p2985_p1 = scmp.ne.s32.totalorder %s2980_s26, 0 }
  0x56   : > { %226 = sbr.rel (%p2985_p1) target bundleno = 1368 (0x558), region = 40 }
  0x5d   : > { %s2261_s27 = sand.u32 1, %s2040_s19   ;;  %p2986_p0 = scmp.ne.s32.totalorder %s2978_s24, 0 }
  0x5e   : > { %s2962_s29 = sshll.u32 %s2261_s27, 3  ;;  %s229_s30 = scalar_lea.sflag [#allocation5], %s2261_s27 }
  0x5f   : > { %s232_s28 = scalar_lea.vmem [#allocation4], %s2962_s29 }
  0x60   : > { %2019 = dma.done.wait (%p2986_p0), %s229_s30, 128  }
  0x61   : > { %2021 = vsyncadd (%p2986_p0), %s229_s30, 4294967168  ;;  %p2987_p11 = scmp.eq.s32.totalorder %s2129_s22, 0 }
  0x63   : > { %2023 = dma.done.wait (%p2987_p11), [#allocation9], 64   ;;  %p2988_p13 = pmov %p2987_p11 }
  0x64   : > { %p2989_p3 = pmov %p2987_p11 }
  0x65   : > { %2025 = vsyncadd (%p2988_p13), [#allocation9], 4294967232 }
  0x66   : > { %2027 = dma.done.wait (%p2989_p3), [#allocation7], 16   ;;  %p2990_p5 = pmov %p2989_p3 }
  0x68   : > { %2029 = vsyncadd (%p2990_p5), [#allocation7], 4294967280 }
  0x69   : > { %245 = sfence }
  0x6a   : > { %v268_v0 = vld [vmem:[%s232_s28] sm:$0xff]  ;;  %vm272_vm0 = vcmask 1043456   ;;  %v2053_v5 = vmov 0.0   ;;  %vm2054_vm1 = vmmov 0   ;;  %v280_v8 = vld [vmem:[#allocation8] sm:$0xf]  ;;  %v372_v20 = vlaneseq }
  0x6b   : > { %v270_v1 = vcombine.high %v268_v0, %v268_v0  ;;  %v273_v2 = vsel %vm272_vm0, %v268_v0, 0.0  ;;  %1794 = vmatprep.subr.mxu0 %v2053_v5  ;;  %452 = vmatprep.mubr.f32.mxu1 %v2053_v5  ;;  %vm282_vm2 = vcmask 31744   ;;  %v2055_v9 = vmov 0   ;;  %v281_v10 = vld [vmem:[%s2955_s2] sm:$0xf]  ;;  %s2059_s17 = smov 1  }
  0x6c   : > { %1796 = vmatprep.mubr.msk.f32.mxu0 %vm2054_vm1, %v2053_v5  ;;  %1890 = vset.pattern.permute.xlu0 %v2055_v9  ;;  %vm474_vm3 = vcmask 410624   ;;  %vm476_vm4 = vcmask 828824   ;;  %v2056_v18 = vmov 839922192   ;;  %v2286_v22 = vshrl.u32 %v372_v20, 7  ;;  %s2060_s13 = smov 2  }
  0x6d   : > { %v274_v3 = vsel %vm272_vm0, %v270_v1, 0.0  ;;  %475 = vst.msk [vmem:[#allocation3] sm:$0x3] %vm474_vm3, %v2053_v5  ;;  %v370_v19 = vunpack.c.l.s4 %v2056_v18  ;;  %v2057_v33 = vmov 0.25   ;;  %v2058_v36 = vmov 1966171168  }
  0x6e   : > { %v275_v4 = vadd.f32 %v274_v3, %v273_v2  ;;  %477 = vst.msk [vmem:[#allocation3 + $0x4] sm:$0x3] %vm476_vm4, %v2053_v5  ;;  %2991 = vst [vmem:[#allocation16_spill] sm:$0xff] %v2286_v22  ;;  %v482_v37 = vunpack.c.l.s4 %v2058_v36  ;;  %v1709_v44 = vld [vmem:[%s2956_s3 + $0x1] ss:$8 sm:$0x3] }
  0x6f   : > { %v371_v21 = vunpack.c.0.s8 %v370_v19  ;;  %v1724_v49 = vld [vmem:[%s2956_s3 + $0x2] ss:$8 sm:$0x3]  ;;  %s2061_s11 = smov 51   ;;  %vm2312_vm5 = vcmp.ge.s32.totalorder %v372_v20, 51  ;;  %vm2316_vm6 = vcmp.lt.s32.totalorder %v372_v20, 307 }
  0x70   : > { %276 = vadd.xlane.f32.xlu0 %v275_v4  ;;  %v483_v42 = vunpack.c.0.s8 %v482_v37  ;;  %vm498_vm7 = vcmask 416768   ;;  %vm504_vm8 = vmand %vm2312_vm5, %vm2316_vm6  ;;  %s1704_s14 = sld [smem:[#allocation10 + $0x40]]  ;;  %s1703_s15 = sld [smem:[#allocation10 + $0x39]]  ;;  %vm543_vm9 = vcmask 916480   ;;  %vm554_vm10 = vcmask 785408  }
  0x71   : > { %v374_v23 = vsub.s32 %v371_v21, %v2286_v22  ;;  %s1705_s9 = sld [smem:[#allocation10 + $0x47]]  ;;  %s1718_s30 = sld [smem:[#allocation10 + $0x3a]]  ;;  %vm565_vm11 = vcmask 654336   ;;  %vm576_vm12 = vcmask 523264   ;;  %vm805_vm13 = vcmask 7168  }
  0x72   : > { %v2304_v47 = vsub.s32 %v483_v42, %v2286_v22  ;;  %s1706_s28 = sld [smem:[#allocation10 + $0x4e]]  ;;  %s1719_s24 = sld [smem:[#allocation10 + $0x41]]  ;;  %vm587_vm14 = vcmask 392192   ;;  %vm951_vm15 = vcmask 15360   ;;  %vm1378_vm1 = vcmask 39936  }
  0x73   : > { %s1733_s26 = sld [smem:[#allocation10 + $0x3b]]  ;;  %s1720_s6 = sld [smem:[#allocation10 + $0x48]]  ;;  %vm813_vm3 = vcmask 1039360   ;;  %vm959_vm4 = vcmask 1031168   ;;  %vm1095_vm5 = vcmask 1022976   ;;  %vm1240_vm6 = vcmask 1014784  }
  0x74   : > { %s2062_s16 = smov 96   ;;  %s1721_s23 = sld [smem:[#allocation10 + $0x4f]] }
  0x75   : > { %s1747_s12 = sld [smem:[#allocation10 + $0x3c]]  ;;  %s2067_s29 = smov 32  }
  0x76   : > { %v750_v57 = vstv %s1704_s14  ;;  %v740_v58 = vstv %s1703_s15  ;;  %s1748_s14 = sld [smem:[#allocation10 + $0x43]]  ;;  %s1707_s15 = sld [smem:[#allocation10 + $0x55]] }
  0x77   : > { %v760_v62 = vstv %s1705_s9  ;;  %v886_v63 = vstv %s1718_s30  ;;  %s2965_s9 = smov 64   ;;  %s1708_s30 = sld [smem:[#allocation10 + $0x5c]] }
  0x78   : > { %v770_v2 = vstv %s1706_s28  ;;  %v896_v3 = vstv %s1719_s24  ;;  %s1734_s28 = sld [smem:[#allocation10 + $0x42]]  ;;  %s1735_s24 = sld [smem:[#allocation10 + $0x49]] }
  0x7d   : > { %v790_v18 = vstv %s1708_s30  ;;  %s1764_s30 = sld [smem:[#allocation10 + $0x4b]] }
  0x7e   : > { %v1042_v19 = vstv %s1734_s28  ;;  %s1777_s28 = sld [smem:[#allocation10 + $0x3e]] }
  0x83   : > { %v1333_v36 = vstv %s1764_s30  ;;  %s1737_s30 = sld [smem:[#allocation10 + $0x57]] }
  0x84   : > { %v1459_v37 = vstv %s1777_s28  ;;  %s1765_s28 = sld [smem:[#allocation10 + $0x52]] }
  0xfd   : > { %v277_v6 = vpop.xlane.xlu0 %276 }
  0xfe   : > { %v279_v7 = vmul.f32 0.00390625, %v277_v6  ;;  %v1032_v6 = vstv %s1733_s26  ;;  %s1762_s26 = sld [smem:[#allocation10 + $0x3d]] }
 0x100   : > { %1795 = vmatpush3.msk.msra.mxu0 %vm272_vm0, %v279_v7  ;;  %v906_v7 = vstv %s1720_s6  ;;  %s1763_s6 = sld [smem:[#allocation10 + $0x44]] }
 0x101   : > { %1797 = vmatmul.mubr.msk.f32.vlgmr.msra.gmra.mrb[0].mxu0 %vm282_vm2, %v280_v8 }
 0x1d4   : > { %v355_v11 = vpop.f32.mrb[0].mxu0 }
 0x1d5   : > { %v356_v12 = vadd.f32 %v355_v11, %v281_v10  ;;  %v1798_v13 = vpop.f32.mrb[1].mxu0  ;;  %v916_v10 = vstv %s1721_s23  ;;  %v1168_v11 = vstv %s1747_s12  ;;  %s1722_s23 = sld [smem:[#allocation10 + $0x56]]  ;;  %s2066_s12 = smov 48  }
 0x1d7   : > { %v1678_v14 = vmul.f32 -1.442695, %v356_v12 }
 0x1d9   : > { %1892 = vpow2.f32 %v1678_v14  ;;  %v1178_v14 = vstv %s1748_s14  ;;  %s1736_s14 = sld [smem:[#allocation10 + $0x50]] }
 0x1e3   : > { %v1893_v15 = vpop.eup %1892 }
 0x1e4   : > { %v362_v16 = vadd.f32 1.0, %v1893_v15  ;;  %v780_v15 = vstv %s1707_s15  ;;  %s1749_s15 = sld [smem:[#allocation10 + $0x4a]] }
 0x1e6   : > { %1894 = vrcp.f32 %v362_v16 }
 0x1f0   : > { %v1895_v17 = vpop.eup %1894 }
 0x1f1   : > { %367 = vperm.xlu0 %1890, %v1895_v17  }
 0x1f5   : > { %802 = vrot.lane.b32.xlu0 %v1709_v44, %s2059_s17  ;;  %s2963_s17 = smov 112  }
 0x1f9   : > { %948 = vrot.lane.b32.xlu0 %v1724_v49, %s2060_s13  ;;  %s2064_s13 = smov 80  }
 0x270   : > { %v368_v24 = vpop.permute.xlu0 %367 }
 0x271   : > { %v375_v25 = vrot.slane %v368_v24, %v374_v23  ;;  %v1052_v23 = vstv %s1735_s24  ;;  %v1313_v24 = vstv %s1762_s26  ;;  %s1751_s24 = sld [smem:[#allocation10 + $0x58]]  ;;  %s1723_s26 = sld [smem:[#allocation10 + $0x5d]] }
 0x273   : > { %v2289_v26 = vmul.f32 %v375_v25, %v268_v0 }
 0x275   : > { %2992 = vst [vmem:[#allocation17_spill] sm:$0xff] %v2289_v26  ;;  %v460_v27 = vsel %vm272_vm0, %v2289_v26, -inf  ;;  %v380_v28 = vcombine.high %v2289_v26, %v2289_v26 }
 0x276   : > { %v461_v29 = vrot.slane %v460_v27, 4 }
 0x277   : > { %1679 = vmatprep.subr.msk.mxu1 %vm272_vm0, %v380_v28  ;;  %v467_v30 = vsel %vm272_vm0, %v380_v28, -inf  ;;  %v1323_v28 = vstv %s1763_s6  ;;  %s1779_s6 = sld [smem:[#allocation10 + $0x4c]] }
 0x278   : > { %v468_v31 = vrot.slane %v467_v30, 4  ;;  %1680 = vmatpush1.msk.msra.mxu1 %vm272_vm0, %v2289_v26  ;;  %v462_v32 = vmax.f32 %v460_v27, %v461_v29  ;;  %v926_v29 = vstv %s1722_s23  ;;  %s1750_s23 = sld [smem:[#allocation10 + $0x51]]  ;;  %vm598_vm0 = vcmask 261120  }
 0x279   : > { %1681 = vmatmul.mubr.msk.f32.vlgmr.msra.gmra.mrb[0].mxu1 %vm282_vm2, %v2057_v33  ;;  %v1188_v33 = vstv %s1749_s15  ;;  %s1778_s15 = sld [smem:[#allocation10 + $0x45]] }
 0x27a   : > { %v469_v34 = vmax.f32 %v467_v30, %v468_v31  ;;  %v463_v35 = vrot.slane %v462_v32, 2 }
 0x27c   : > { %v470_v38 = vrot.slane %v469_v34, 2  ;;  %v464_v39 = vmax.f32 %v462_v32, %v463_v35  ;;  %v1062_v32 = vstv %s1736_s14  ;;  %s1752_s14 = sld [smem:[#allocation10 + $0x5f]] }
 0x27d   : > { %v1479_v44 = vstv %s1779_s6  ;;  %s1741_s6 = sld [smem:[#allocation10 + $0x12]] }
 0x27e   : > { %v471_v40 = vmax.f32 %v469_v34, %v470_v38  ;;  %v465_v41 = vrot.slane %v464_v39, 1 }
 0x280   : > { %v472_v43 = vrot.slane %v471_v40, 1  ;;  %v466_v45 = vmax.f32 %v464_v39, %v465_v41  ;;  %v936_v41 = vstv %s1723_s26  ;;  %s1696_s26 = sld [smem:[#allocation10 + $0x8]] }
 0x282   : > { %v473_v46 = vmax.f32 %v471_v40, %v472_v43  ;;  %v1208_v40 = vstv %s1751_s24  ;;  %v1218_v49 = vstv %s1752_s14  ;;  %s1738_s24 = sld [smem:[#allocation10 + $0x5e]]  ;;  %s1701_s14 = sld [smem:[#allocation10 + $0x2b]] }
 0x284   : > { %v508_v48 = vcombine.low %v466_v45, %v473_v46  ;;  %v1198_v45 = vstv %s1750_s23  ;;  %s1697_s23 = sld [smem:[#allocation10 + $0xf]] }
 0x286   : > { %v515_v50 = vrot.slane %v508_v48, %v2304_v47 }
 0x288   : > { %v522_v51 = vrot.slane %v515_v50, %v2304_v47  ;;  %v1469_v50 = vstv %s1778_s15  ;;  %s1711_s15 = sld [smem:[#allocation10 + $0x9]] }
 0x28a   : > { %523 = vrot.lane.b32.xlu1 %v522_v51, %s2061_s11 }
 0x2fc   : > { %v524_v54 = vpop.permute.xlu1 %523 }
 0x2fd   : > { %v525_v55 = vrot.slane %v524_v54, 7 }
 0x2ff   : > { %v526_v56 = vsel %vm498_vm7, %v525_v55, %v524_v54  ;;  %v1072_v55 = vstv %s1737_s30  ;;  %s1728_s30 = sld [smem:[#allocation10 + $0x18]] }
 0x300   : > { %529 = vst.msk [vmem:[#allocation3 + $0x1] ss:$2 sm:$0x7] %vm504_vm8, %v526_v56 }
 0x307   : > { %v2330_v59 = vld [vmem:[#allocation3 + $0x1] ss:$2 sm:$0x7] }
 0x308   : > { %v751_v60 = vmul.f32 %v750_v57, %v2330_v59  ;;  %v741_v61 = vmul.f32 %v740_v58, %v2330_v59  ;;  %v761_v0 = vmul.f32 %v760_v62, %v2330_v59  ;;  %v887_v1 = vmul.f32 %v886_v63, %v2330_v59 }
 0x309   : > { %v771_v4 = vmul.f32 %v770_v2, %v2330_v59  ;;  %v897_v5 = vmul.f32 %v896_v3, %v2330_v59  ;;  %v1033_v8 = vmul.f32 %v1032_v6, %v2330_v59  ;;  %v907_v9 = vmul.f32 %v906_v7, %v2330_v59 }
 0x30a   : > { %753 = vrot.lane.b32.xlu0 %v751_v60, %s2062_s16  ;;  %743 = vrot.lane.b32.xlu1 %v741_v61, %s2963_s17  ;;  %v917_v12 = vmul.f32 %v916_v10, %v2330_v59  ;;  %v1169_v13 = vmul.f32 %v1168_v11, %v2330_v59  ;;  %v1179_v16 = vmul.f32 %v1178_v14, %v2330_v59  ;;  %v1343_v57 = vstv %s1765_s28  ;;  %s1698_s28 = sld [smem:[#allocation10 + $0x16]] }
 0x30b   : > { %v781_v17 = vmul.f32 %v780_v15, %v2330_v59  ;;  %v791_v20 = vmul.f32 %v790_v18, %v2330_v59  ;;  %v1043_v21 = vmul.f32 %v1042_v19, %v2330_v59  ;;  %v1053_v25 = vmul.f32 %v1052_v23, %v2330_v59 }
 0x30c   : > { %v1314_v27 = vmul.f32 %v1313_v24, %v2330_v59  ;;  %v1324_v30 = vmul.f32 %v1323_v28, %v2330_v59  ;;  %v927_v31 = vmul.f32 %v926_v29, %v2330_v59  ;;  %v1063_v34 = vmul.f32 %v1062_v32, %v2330_v59 }
 0x30d   : > { %v1189_v35 = vmul.f32 %v1188_v33, %v2330_v59  ;;  %v1334_v38 = vmul.f32 %v1333_v36, %v2330_v59  ;;  %v1460_v39 = vmul.f32 %v1459_v37, %v2330_v59  ;;  %v1209_v42 = vmul.f32 %v1208_v40, %v2330_v59 }
 0x30e   : > { %763 = vrot.lane.b32.xlu0 %v761_v0, %s2064_s13  ;;  %889 = vrot.lane.b32.xlu1 %v887_v1, %s2963_s17  ;;  %v937_v43 = vmul.f32 %v936_v41, %v2330_v59  ;;  %v1480_v46 = vmul.f32 %v1479_v44, %v2330_v59  ;;  %v1199_v48 = vmul.f32 %v1198_v45, %v2330_v59  ;;  %v1082_v1 = vstv %s1738_s24  ;;  %s1756_s24 = sld [smem:[#allocation10 + $0x13]] }
 0x30f   : > { %v1219_v51 = vmul.f32 %v1218_v49, %v2330_v59  ;;  %v1470_v54 = vmul.f32 %v1469_v50, %v2330_v59  ;;  %v1073_v56 = vmul.f32 %v1072_v55, %v2330_v59  ;;  %v1344_v58 = vmul.f32 %v1343_v57, %v2330_v59  ;;  %v2459_v49 = vpop.permute.xlu0 %802 }
 0x310   : > { %v1083_v2 = vmul.f32 %v1082_v1, %v2330_v59  ;;  %v676_v23 = vstv %s1696_s26  ;;  %v1114_v28 = vstv %s1741_s6  ;;  %v686_v29 = vstv %s1697_s23  ;;  %s1716_s26 = sld [smem:[#allocation10 + $0x2c]]  ;;  %s1699_s6 = sld [smem:[#allocation10 + $0x1d]] }
 0x311   : > { %s1743_s23 = sld [smem:[#allocation10 + $0x20]] }
 0x312   : > { %773 = vrot.lane.b32.xlu0 %v771_v4, %s2965_s9  ;;  %899 = vrot.lane.b32.xlu1 %v897_v5, %s2062_s16 }
 0x316   : > { %1035 = vrot.lane.b32.xlu0 %v1033_v8, %s2963_s17  ;;  %909 = vrot.lane.b32.xlu1 %v907_v9, %s2064_s13 }
 0x31a   : > { %919 = vrot.lane.b32.xlu0 %v917_v12, %s2965_s9  ;;  %1171 = vrot.lane.b32.xlu1 %v1169_v13, %s2963_s17 }
 0x31e   : > { %1181 = vrot.lane.b32.xlu0 %v1179_v16, %s2062_s16  ;;  %783 = vrot.lane.b32.xlu1 %v781_v17, %s2066_s12 }
 0x322   : > { %793 = vrot.lane.b32.xlu0 %v791_v20, %s2067_s29  ;;  %1045 = vrot.lane.b32.xlu1 %v1043_v21, %s2062_s16 }
 0x326   : > { %1055 = vrot.lane.b32.xlu0 %v1053_v25, %s2064_s13  ;;  %1316 = vrot.lane.b32.xlu1 %v1314_v27, %s2963_s17 }
 0x32a   : > { %1326 = vrot.lane.b32.xlu0 %v1324_v30, %s2062_s16  ;;  %929 = vrot.lane.b32.xlu1 %v927_v31, %s2066_s12  ;;  %v726_v30 = vstv %s1701_s14  ;;  %v822_v31 = vstv %s1711_s15  ;;  %s1713_s14 = sld [smem:[#allocation10 + $0x17]]  ;;  %s1771_s15 = sld [smem:[#allocation10 + $0x14]] }
 0x32e   : > { %1065 = vrot.lane.b32.xlu0 %v1063_v34, %s2965_s9  ;;  %1191 = vrot.lane.b32.xlu1 %v1189_v35, %s2064_s13  ;;  %v988_v34 = vstv %s1728_s30  ;;  %v696_v35 = vstv %s1698_s28  ;;  %s1726_s30 = sld [smem:[#allocation10 + $0xa]]  ;;  %s1730_s28 = sld [smem:[#allocation10 + $0x26]] }
 0x332   : > { %1336 = vrot.lane.b32.xlu0 %v1334_v38, %s2064_s13  ;;  %1462 = vrot.lane.b32.xlu1 %v1460_v39, %s2963_s17  ;;  %v1259_v38 = vstv %s1756_s24  ;;  %s1740_s24 = sld [smem:[#allocation10 + $0xb]] }
 0x334   : > { %v968_v55 = vstv %s1726_s30  ;;  %s1760_s30 = sld [smem:[#allocation10 + $0x2f]] }
 0x336   : > { %1211 = vrot.lane.b32.xlu0 %v1209_v42, %s2066_s12  ;;  %939 = vrot.lane.b32.xlu1 %v937_v43, %s2067_s29  ;;  %v872_v42 = vstv %s1716_s26  ;;  %v706_v43 = vstv %s1699_s6  ;;  %s1700_s26 = sld [smem:[#allocation10 + $0x24]]  ;;  %s1731_s6 = sld [smem:[#allocation10 + $0x2d]] }
 0x33a   : > { %1482 = vrot.lane.b32.xlu0 %v1480_v46, %s2064_s13  ;;  %1201 = vrot.lane.b32.xlu1 %v1199_v48, %s2965_s9  ;;  %v1134_v46 = vstv %s1743_s23  ;;  %v842_v48 = vstv %s1713_s14  ;;  %s1727_s23 = sld [smem:[#allocation10 + $0x11]]  ;;  %s1759_s14 = sld [smem:[#allocation10 + $0x28]] }
 0x33c   : > { %v716_v1 = vstv %s1700_s26  ;;  %s1780_s26 = sld [smem:[#allocation10 + $0x53]] }
 0x33e   : > { %1221 = vrot.lane.b32.xlu0 %v1219_v51, %s2067_s29  ;;  %1472 = vrot.lane.b32.xlu1 %v1470_v54, %s2062_s16  ;;  %v1405_v54 = vstv %s1771_s15  ;;  %s1755_s15 = sld [smem:[#allocation10 + $0xc]] }
 0x342   : > { %1075 = vrot.lane.b32.xlu1 %v1073_v56, %s2066_s12  ;;  %v2467_v56 = vpop.permute.xlu0 %948 }
 0x346   : > { %1346 = vrot.lane.b32.xlu1 %v1344_v58, %s2965_s9 }
 0x34c   : > { %v454_v60 = vpop.f32.mrb[0].mxu1 }
 0x34d   : > { %v456_v61 = vpop.f32.mrb[1].mxu1 }
 0x34e   : > { %v480_v62 = vcombine.low %v454_v60, %v456_v61  ;;  %v1008_v60 = vstv %s1730_s28  ;;  %v1104_v61 = vstv %s1740_s24  ;;  %s1715_s28 = sld [smem:[#allocation10 + $0x25]]  ;;  %s1775_s24 = sld [smem:[#allocation10 + $0x30]] }
 0x350   : > { %v487_v63 = vrot.slane %v480_v62, %v2304_v47 }
 0x352   : > { %v494_v0 = vrot.slane %v487_v63, %v2304_v47 }
 0x354   : > { %495 = vrot.lane.b32.xlu1 %v494_v0, %s2061_s11  ;;  %s1714_s11 = sld [smem:[#allocation10 + $0x1e]] }
 0x358   : > { %1085 = vrot.lane.b32.xlu1 %v1083_v2, %s2067_s29 }
 0x35a   : > { %v852_v21 = vstv %s1714_s11  ;;  %s1712_s11 = sld [smem:[#allocation10 + $0x10]] }
 0x360   : > { %v832_v39 = vstv %s1712_s11  ;;  %s1758_s11 = sld [smem:[#allocation10 + $0x21]] }
 0x366   : > { %v1279_v0 = vstv %s1758_s11  ;;  %s1742_s11 = sld [smem:[#allocation10 + $0x19]] }
 0x37c   : > { %v2397_v3 = vpop.permute.xlu1 %743  ;;  %v2475_v2 = vpop.permute.xlu0 %753 }
 0x380   : > { %v2399_v4 = vpop.permute.xlu1 %889 }
 0x384   : > { %v2401_v5 = vpop.permute.xlu1 %899 }
 0x388   : > { %v2403_v6 = vpop.permute.xlu1 %909 }
 0x38c   : > { %v2405_v7 = vpop.permute.xlu1 %1171 }
 0x390   : > { %v2407_v8 = vpop.permute.xlu1 %783 }
 0x394   : > { %v2409_v47 = vpop.permute.xlu1 %1045 }
 0x398   : > { %v2411_v9 = vpop.permute.xlu1 %1316 }
 0x39c   : > { %v2413_v10 = vpop.permute.xlu1 %929 }
 0x3a0   : > { %v2415_v11 = vpop.permute.xlu1 %1191 }
 0x3a1   : > { %2997 = vst [vmem:[#allocation18_spill] sm:$0xff] %v2415_v11 }
 0x3a4   : > { %v2417_v12 = vpop.permute.xlu1 %1462 }
 0x3a5   : > { %2998 = vst [vmem:[#allocation19_spill] sm:$0xff] %v2417_v12  ;;  %v745_v12 = vrot.slane %v2397_v3, 1 }
 0x3a8   : > { %v2419_v13 = vpop.permute.xlu1 %939 }
 0x3ac   : > { %v2421_v14 = vpop.permute.xlu1 %1201 }
 0x3ad   : > { %2999 = vst [vmem:[#allocation20_spill] sm:$0xff] %v2421_v14 }
 0x3b0   : > { %v2423_v15 = vpop.permute.xlu1 %1472 }
 0x3b1   : > { %3000 = vst [vmem:[#allocation21_spill] sm:$0xff] %v2423_v15 }
 0x3b4   : > { %v2425_v16 = vpop.permute.xlu1 %1075 }
 0x3b8   : > { %v2427_v17 = vpop.permute.xlu1 %1346 }
 0x3b9   : > { %3001 = vst [vmem:[#allocation22_spill] sm:$0xff] %v2427_v17 }
 0x3c6   : > { %v496_v18 = vpop.permute.xlu1 %495 }
 0x3c7   : > { %v497_v19 = vrot.slane %v496_v18, 7 }
 0x3c9   : > { %v499_v20 = vsel %vm498_vm7, %v497_v19, %v496_v18  ;;  %vm1386_vm7 = vcmask 1006592  }
 0x3ca   : > { %505 = vst.msk [vmem:[#allocation3] ss:$2 sm:$0x7] %vm504_vm8, %v499_v20  ;;  %v1018_v20 = vstv %s1731_s6  ;;  %s1770_s6 = sld [smem:[#allocation10 + $0xd]]  ;;  %vm1532_vm8 = vcmask 998400  }
 0x3d1   : > { %v2435_v24 = vld [vmem:[#allocation3] ss:$2 sm:$0x7] }
 0x3d2   : > { %v853_v25 = vmul.f32 %v852_v21, %v2435_v24  ;;  %v677_v27 = vmul.f32 %v676_v23, %v2435_v24  ;;  %v1115_v52 = vmul.f32 %v1114_v28, %v2435_v24  ;;  %v687_v53 = vmul.f32 %v686_v29, %v2435_v24  ;;  %v2483_v23 = vpop.permute.xlu0 %763 }
 0x3d3   : > { %v727_v32 = vmul.f32 %v726_v30, %v2435_v24  ;;  %v823_v33 = vmul.f32 %v822_v31, %v2435_v24  ;;  %v989_v36 = vmul.f32 %v988_v34, %v2435_v24  ;;  %v697_v37 = vmul.f32 %v696_v35, %v2435_v24 }
 0x3d4   : > { %855 = vrot.lane.b32.xlu0 %v853_v25, %s2965_s9  ;;  %679 = vrot.lane.b32.xlu1 %v677_v27, %s2963_s17  ;;  %v1260_v40 = vmul.f32 %v1259_v38, %v2435_v24  ;;  %v833_v41 = vmul.f32 %v832_v39, %v2435_v24  ;;  %v873_v44 = vmul.f32 %v872_v42, %v2435_v24  ;;  %v978_v21 = vstv %s1727_s23  ;;  %s1767_s23 = sld [smem:[#allocation10 + $0x60]] }
 0x3d5   : > { %v707_v45 = vmul.f32 %v706_v43, %v2435_v24  ;;  %v1135_v50 = vmul.f32 %v1134_v46, %v2435_v24  ;;  %v843_v51 = vmul.f32 %v842_v48, %v2435_v24  ;;  %v1406_v57 = vmul.f32 %v1405_v54, %v2435_v24  ;;  %v1768_v54 = vld [vmem:[%s2956_s3 + $0x5] ss:$8 sm:$0x3] }
 0x3d6   : > { %v969_v58 = vmul.f32 %v968_v55, %v2435_v24  ;;  %v1009_v62 = vmul.f32 %v1008_v60, %v2435_v24  ;;  %v1105_v63 = vmul.f32 %v1104_v61, %v2435_v24  ;;  %v1280_v18 = vmul.f32 %v1279_v0, %v2435_v24  ;;  %v1783_v60 = vld [vmem:[%s2956_s3 + $0x6] ss:$8 sm:$0x3] }
 0x3d7   : > { %v717_v19 = vmul.f32 %v716_v1, %v2435_v24  ;;  %v1019_v25 = vmul.f32 %v1018_v20, %v2435_v24  ;;  %v979_v27 = vmul.f32 %v978_v21, %v2435_v24  ;;  %v1289_v28 = vstv %s1759_s14  ;;  %s1729_s14 = sld [smem:[#allocation10 + $0x1f]] }
 0x3d8   : > { %1117 = vrot.lane.b32.xlu0 %v1115_v52, %s2062_s16  ;;  %689 = vrot.lane.b32.xlu1 %v687_v53, %s2062_s16  ;;  %v1249_v29 = vstv %s1755_s15  ;;  %v1290_v52 = vmul.f32 %v1289_v28, %v2435_v24  ;;  %v1299_v30 = vstv %s1760_s30  ;;  %s1757_s15 = sld [smem:[#allocation10 + $0x1a]]  ;;  %s1744_s30 = sld [smem:[#allocation10 + $0x27]] }
 0x3d9   : > { %v1250_v53 = vmul.f32 %v1249_v29, %v2435_v24  ;;  %v862_v31 = vstv %s1715_s28  ;;  %v1445_v35 = vstv %s1775_s24  ;;  %s1772_s28 = sld [smem:[#allocation10 + $0x1b]]  ;;  %s1683_s24 = sld [smem:[#allocation10 + $0xe]] }
 0x3da   : > { %v863_v34 = vmul.f32 %v862_v31, %v2435_v24  ;;  %v1446_v38 = vmul.f32 %v1445_v35, %v2435_v24 }
 0x3dc   : > { %729 = vrot.lane.b32.xlu0 %v727_v32, %s2067_s29  ;;  %825 = vrot.lane.b32.xlu1 %v823_v33, %s2963_s17  ;;  %v2491_v32 = vpop.permute.xlu0 %773  ;;  %v1300_v33 = vmul.f32 %v1299_v30, %v2435_v24 }
 0x3e0   : > { %991 = vrot.lane.b32.xlu0 %v989_v36, %s2064_s13  ;;  %699 = vrot.lane.b32.xlu1 %v697_v37, %s2064_s13  ;;  %v1124_v36 = vstv %s1742_s11  ;;  %v2499_v37 = vpop.permute.xlu0 %1035  ;;  %s1773_s11 = sld [smem:[#allocation10 + $0x22]] }
 0x3e1   : > { %v1125_v39 = vmul.f32 %v1124_v36, %v2435_v24 }
 0x3e4   : > { %1262 = vrot.lane.b32.xlu0 %v1260_v40, %s2062_s16  ;;  %835 = vrot.lane.b32.xlu1 %v833_v41, %s2062_s16  ;;  %v1489_v40 = vstv %s1780_s26  ;;  %v1395_v41 = vstv %s1770_s6  ;;  %v2507_v46 = vpop.permute.xlu0 %919  ;;  %s1745_s6 = sld [smem:[#allocation10 + $0x2e]]  ;;  %s1687_s26 = sld [smem:[#allocation10 + $0x2a]] }
 0x3e5   : > { %v1490_v42 = vmul.f32 %v1489_v40, %v2330_v59  ;;  %v1396_v43 = vmul.f32 %v1395_v41, %v2435_v24 }
 0x3e6   : > { %v1425_v28 = vstv %s1773_s11  ;;  %s2622_s11 = sld [smem:[#allocation10 + $0x35]] }
 0x3e8   : > { %875 = vrot.lane.b32.xlu0 %v873_v44, %s2067_s29  ;;  %709 = vrot.lane.b32.xlu1 %v707_v45, %s2965_s9  ;;  %v1363_v44 = vstv %s1767_s23  ;;  %v998_v45 = vstv %s1729_s14  ;;  %v2518_v55 = vpop.permute.xlu0 %1181  ;;  %s1685_s23 = sld [smem:[#allocation10 + $0x1c]]  ;;  %s2068_s14 = smov 5  }
 0x3e9   : > { %v1364_v48 = vmul.f32 %v1363_v44, %v2330_v59 }
 0x3ea   : > { %v592_v29 = vstv %s1687_s26  ;;  %s2070_s26 = smov 4  }
 0x3ec   : > { %1137 = vrot.lane.b32.xlu0 %v1135_v50, %s2965_s9  ;;  %845 = vrot.lane.b32.xlu1 %v843_v51, %s2064_s13  ;;  %v999_v50 = vmul.f32 %v998_v45, %v2435_v24  ;;  %v1269_v51 = vstv %s1757_s15  ;;  %v2526_v0 = vpop.permute.xlu0 %793  ;;  %s2616_s15 = sld [smem:[#allocation10 + $0x36]] }
 0x3ee   : > { %v570_v20 = vstv %s1685_s23  ;;  %s1781_s23 = sld [smem:[#allocation10 + $0x5a]] }
 0x3f0   : > { %1408 = vrot.lane.b32.xlu0 %v1406_v57, %s2062_s16  ;;  %971 = vrot.lane.b32.xlu1 %v969_v58, %s2963_s17  ;;  %v1270_v57 = vmul.f32 %v1269_v51, %v2435_v24  ;;  %v1144_v58 = vstv %s1744_s30  ;;  %s1690_s30 = sld [smem:[#allocation10 + $0x3f]]  ;;  %v2533_v21 = vpop.permute.xlu0 %1055 }
 0x3f1   : > { %v1145_v61 = vmul.f32 %v1144_v58, %v2435_v24 }
 0x3f4   : > { %1011 = vrot.lane.b32.xlu0 %v1009_v62, %s2066_s12  ;;  %1107 = vrot.lane.b32.xlu1 %v1105_v63, %s2963_s17  ;;  %v1415_v62 = vstv %s1772_s28  ;;  %v548_v63 = vstv %s1683_s24  ;;  %s1692_s28 = sld [smem:[#allocation10 + $0x4d]]  ;;  %s3002_s24 = smov 64  }
 0x3f5   : > { %v1416_v1 = vmul.f32 %v1415_v62, %v2435_v24  ;;  %v1499_v45 = vstv %s1781_s23  ;;  %s2610_s23 = sld [smem:[#allocation10 + $0x34]] }
 0x3f6   : > { %v619_v31 = vstv %s1690_s30  ;;  %s1686_s30 = sld [smem:[#allocation10 + $0x23]] }
 0x3f7   : > { %v620_v35 = vmul.f32 %v619_v31, %v2330_v59 }
 0x3f8   : > { %1282 = vrot.lane.b32.xlu0 %v1280_v18, %s2965_s9  ;;  %719 = vrot.lane.b32.xlu1 %v717_v19, %s2066_s12  ;;  %v549_v18 = vmul.f32 %v548_v63, %v2435_v24  ;;  %v1154_v19 = vstv %s1745_s6  ;;  %s1694_s6 = sld [smem:[#allocation10 + $0x5b]] }
 0x3fc   : > { %1021 = vrot.lane.b32.xlu0 %v1019_v25, %s2067_s29  ;;  %981 = vrot.lane.b32.xlu1 %v979_v27, %s2062_s16  ;;  %v1155_v25 = vmul.f32 %v1154_v19, %v2435_v24  ;;  %v571_v27 = vmul.f32 %v570_v20, %v2435_v24  ;;  %v2576_v19 = vpop.permute.xlu1 %1085 }
 0x400   : > { %1292 = vrot.lane.b32.xlu0 %v1290_v52, %s2066_s12  ;;  %1252 = vrot.lane.b32.xlu1 %v1250_v53, %s2963_s17  ;;  %v1426_v52 = vmul.f32 %v1425_v28, %v2435_v24  ;;  %v593_v53 = vmul.f32 %v592_v29, %v2435_v24 }
 0x404   : > { %1302 = vrot.lane.b32.xlu0 %v1300_v33, %s2067_s29  ;;  %865 = vrot.lane.b32.xlu1 %v863_v34, %s2066_s12  ;;  %v2541_v33 = vpop.permute.xlu0 %1326 }
 0x408   : > { %1448 = vrot.lane.b32.xlu0 %v1446_v38, %s2067_s29  ;;  %1127 = vrot.lane.b32.xlu1 %v1125_v39, %s2064_s13  ;;  %v639_v38 = vstv %s1692_s28  ;;  %v2549_v39 = vpop.permute.xlu0 %1065  ;;  %s3005_s28 = smov 112  }
 0x409   : > { %v640_v41 = vmul.f32 %v639_v38, %v2330_v59 }
 0x40c   : > { %1492 = vrot.lane.b32.xlu0 %v1490_v42, %s2965_s9  ;;  %1398 = vrot.lane.b32.xlu1 %v1396_v43, %s2963_s17  ;;  %s1774_s17 = sld [smem:[#allocation10 + $0x29]]  ;;  %v659_v42 = vstv %s1694_s6  ;;  %v1753_v43 = vld [vmem:[%s2956_s3 + $0x4] ss:$8 sm:$0x3] }
 0x40d   : > { %v660_v44 = vmul.f32 %v659_v42, %v2330_v59  ;;  %s1695_s6 = sld [smem:[#allocation10 + $0x1]] }
 0x410   : > { %1366 = vrot.lane.b32.xlu0 %v1364_v48, %s2067_s29  ;;  %1001 = vrot.lane.b32.xlu1 %v999_v50, %s2965_s9  ;;  %s2069_s9 = smov 6   ;;  %v2559_v48 = vpop.permute.xlu0 %1336  ;;  %v1500_v50 = vmul.f32 %v1499_v45, %v2330_v59 }
 0x412   : > { %v1435_v30 = vstv %s1774_s17  ;;  %s1684_s17 = sld [smem:[#allocation10 + $0x15]] }
 0x413   : > { %v1436_v34 = vmul.f32 %v1435_v30, %v2435_v24 }
 0x414   : > { %1375 = vrot.lane.b32.xlu0 %v1768_v54, %s2068_s14  ;;  %1272 = vrot.lane.b32.xlu1 %v1270_v57, %s2064_s13  ;;  %s1782_s14 = sld [smem:[#allocation10 + $0x61]]  ;;  %v2564_v54 = vpop.permute.xlu0 %1211 }
 0x415   : > { %3003 = vst [vmem:[#allocation23_spill] sm:$0xff] %v2564_v54 }
 0x418   : > { %1521 = vrot.lane.b32.xlu0 %v1783_v60, %s2069_s9  ;;  %1147 = vrot.lane.b32.xlu1 %v1145_v61, %s2066_s12  ;;  %s1766_s9 = sld [smem:[#allocation10 + $0x59]]  ;;  %v559_v61 = vstv %s1684_s17  ;;  %v2569_v62 = vpop.permute.xlu0 %1482  ;;  %s2643_s17 = sld [smem:[#allocation10 + $0x5]] }
 0x419   : > { %3004 = vst [vmem:[#allocation24_spill] sm:$0xff] %v2569_v62  ;;  %v560_v63 = vmul.f32 %v559_v61, %v2435_v24 }
 0x41a   : > { %v1509_v51 = vstv %s1782_s14  ;;  %s2613_s14 = sld [smem:[#allocation10 + $0x2]] }
 0x41b   : > { %v1510_v57 = vmul.f32 %v1509_v51, %v2330_v59 }
 0x41c   : > { %1418 = vrot.lane.b32.xlu1 %v1416_v1, %s2064_s13  ;;  %551 = vrot.lane.b32.xlu0 %v549_v18, %s2062_s16  ;;  %v581_v1 = vstv %s1686_s30  ;;  %v2574_v18 = vpop.permute.xlu0 %1221  ;;  %s2645_s30 = sld [smem:[#allocation10 + $0x6]] }
 0x41d   : > { %3006 = vst [vmem:[#allocation25_spill] sm:$0xff] %v2574_v18  ;;  %v582_v20 = vmul.f32 %v581_v1, %v2435_v24 }
 0x41e   : > { %v1353_v36 = vstv %s1766_s9  ;;  %s1689_s9 = sld [smem:[#allocation10 + $0x38]] }
 0x41f   : > { %v1354_v40 = vmul.f32 %v1353_v36, %v2330_v59 }
 0x420   : > { %1157 = vrot.lane.b32.xlu1 %v1155_v25, %s2067_s29  ;;  %573 = vrot.lane.b32.xlu0 %v571_v27, %s3002_s24 }
 0x424   : > { %1428 = vrot.lane.b32.xlu1 %v1426_v52, %s3002_s24  ;;  %595 = vrot.lane.b32.xlu0 %v593_v53, %s2067_s29  ;;  %v609_v25 = vstv %s1689_s9  ;;  %s2071_s9 = smov 127  }
 0x425   : > { %v610_v29 = vmul.f32 %v609_v25, %v2330_v59 }
 0x428   : > { %1438 = vrot.lane.b32.xlu1 %v1436_v34, %s2066_s12  ;;  %622 = vrot.lane.b32.xlu0 %v620_v35, %s2062_s16  ;;  %s1682_s16 = sld [smem:[#allocation10 + $0x7]] }
 0x42c   : > { %1356 = vrot.lane.b32.xlu1 %v1354_v40, %s2066_s12  ;;  %642 = vrot.lane.b32.xlu0 %v640_v41, %s3002_s24  ;;  %s1691_s24 = sld [smem:[#allocation10 + $0x46]] }
 0x42e   : > { %v537_v58 = vstv %s1682_s16  ;;  %s2634_s16 = sld [smem:[#allocation10 + $0x3]] }
 0x42f   : > { %v538_v60 = vmul.f32 %v537_v58, %v2435_v24 }
 0x430   : > { %1230 = vrot.lane.b32.xlu1 %v1753_v43, %s2070_s26  ;;  %662 = vrot.lane.b32.xlu0 %v660_v44, %s2067_s29  ;;  %s2636_s26 = sld [smem:[#allocation10 + $0x4]] }
 0x432   : > { %v629_v52 = vstv %s1691_s24  ;;  %s2823_s24 = sld [smem:[#allocation10 + $0x37]] }
 0x433   : > { %v630_v31 = vmul.f32 %v629_v52, %v2330_v59 }
 0x434   : > { %1502 = vrot.lane.b32.xlu1 %v1500_v50, %s2066_s12 }
 0x438   : > { %1512 = vrot.lane.b32.xlu1 %v1510_v57, %s2067_s29  ;;  %s1693_s29 = sld [smem:[#allocation10 + $0x54]]  ;;  %v672_v57 = vstv %s1695_s6  ;;  %s2074_s6 = smov 124  }
 0x43c   : > { %540 = vrot.lane.b32.xlu1 %v538_v60, %s3005_s28 }
 0x43e   : > { %v649_v34 = vstv %s1693_s29  ;;  %s2073_s29 = smov 125  }
 0x43f   : > { %v650_v38 = vmul.f32 %v649_v34, %v2330_v59 }
 0x440   : > { %562 = vrot.lane.b32.xlu1 %v560_v63, %s2064_s13 }
 0x444   : > { %584 = vrot.lane.b32.xlu1 %v582_v20, %s2066_s12  ;;  %v673_v20 = vmul.f32 %v672_v57, %v2435_v24 }
 0x446   : > { %v680_v27 = vpop.permute.xlu1 %679  ;;  %v2580_v28 = vpop.permute.xlu0 %855 }
 0x447   : > { %v681_v51 = vrot.slane %v680_v27, 1 }
 0x448   : > { %612 = vrot.lane.b32.xlu1 %v610_v29, %s3005_s28  ;;  %s2072_s28 = smov 126  }
 0x449   : > { %v682_v63 = vsel %vm543_vm9, %v680_v27, %v681_v51 }
 0x44a   : > { %v690_v53 = vpop.permute.xlu1 %689  ;;  %v2584_v30 = vpop.permute.xlu0 %1117  ;;  %v684_v52 = vadd.f32 %v682_v63, %v673_v20  ;;  %v1028_v63 = vstv %s2610_s23  ;;  %v818_v20 = vstv %s2613_s14  ;;  %s530_s23 = sld [smem:[#allocation10]]  ;;  %s1688_s14 = sld [smem:[#allocation10 + $0x31]] }
 0x44b   : > { %v691_v58 = vrot.slane %v690_v53, 1 }
 0x44c   : > { %632 = vrot.lane.b32.xlu1 %v630_v31, %s2064_s13  ;;  %s2602_s13 = sld [smem:[#allocation10 + $0x32]] }
 0x44d   : > { %v692_v25 = vsel %vm554_vm10, %v690_v53, %v691_v58 }
 0x44e   : > { %v826_v35 = vpop.permute.xlu1 %825  ;;  %v2588_v36 = vpop.permute.xlu0 %729  ;;  %v694_v34 = vadd.f32 %v692_v25, %v684_v52  ;;  %v804_v25 = vrot.slane %v2459_v49, 7 }
 0x44f   : > { %v827_v51 = vrot.slane %v826_v35, 1  ;;  %v731_v62 = vrot.slane %v2588_v36, 1 }
 0x450   : > { %652 = vrot.lane.b32.xlu1 %v650_v38, %s2066_s12  ;;  %s2608_s12 = sld [smem:[#allocation10 + $0x33]] }
 0x452   : > { %v700_v40 = vpop.permute.xlu1 %699  ;;  %v2592_v41 = vpop.permute.xlu0 %991  ;;  %v736_v53 = vstv %s2602_s13  ;;  %s2075_s13 = smov 123  }
 0x453   : > { %v701_v1 = vrot.slane %v700_v40, 1 }
 0x455   : > { %v702_v27 = vsel %vm565_vm11, %v700_v40, %v701_v1 }
 0x456   : > { %v2594_v42 = vpop.permute.xlu1 %835  ;;  %v2596_v43 = vpop.permute.xlu0 %1262  ;;  %v704_v58 = vadd.f32 %v702_v27, %v694_v34  ;;  %v882_v22 = vstv %s2608_s12  ;;  %v828_v27 = vsel %vm543_vm9, %v826_v35, %v827_v51  ;;  %v732_v35 = vsel %vm598_vm0, %v2588_v36, %v731_v62  ;;  %s2076_s12 = smov 122  }
 0x457   : > { %v837_v40 = vrot.slane %v2594_v42, 1  ;;  %v1164_v51 = vstv %s2622_s11  ;;  %v883_v36 = vmul.f32 %v882_v22, %v2330_v59 }
 0x458   : > { %v2683_v22 = vmul.f32 %v1164_v51, %v2330_v59 }
 0x45a   : > { %v710_v44 = vpop.permute.xlu1 %709  ;;  %v2598_v45 = vpop.permute.xlu0 %875  ;;  %3007 = vst [vmem:[#allocation26_spill] sm:$0xff] %v2683_v22 }
 0x45b   : > { %v711_v29 = vrot.slane %v710_v44, 1 }
 0x45d   : > { %v712_v57 = vsel %vm576_vm12, %v710_v44, %v711_v29  ;;  %v1309_v44 = vstv %s2616_s15  ;;  %v950_v29 = vrot.slane %v2467_v56, 7 }
 0x45e   : > { %v2600_v50 = vpop.permute.xlu1 %845  ;;  %v2604_v60 = vpop.permute.xlu0 %1137  ;;  %v714_v52 = vadd.f32 %v712_v57, %v704_v58  ;;  %v819_v57 = vmul.f32 %v818_v20, %v2435_v24  ;;  %v737_v20 = vmul.f32 %v736_v53, %v2330_v59 }
 0x45f   : > { %v847_v34 = vrot.slane %v2600_v50, 1 }
 0x460   : > { %v830_v14 = vadd.f32 %v828_v27, %v819_v57 }
 0x461   : > { %v848_v62 = vsel %vm565_vm11, %v2600_v50, %v847_v34  ;;  %v2680_v50 = vmul.f32 %v1309_v44, %v2330_v59 }
 0x462   : > { %v2606_v61 = vpop.permute.xlu1 %971  ;;  %v2624_v38 = vpop.permute.xlu0 %1408 }
 0x466   : > { %v2619_v31 = vpop.permute.xlu1 %1107  ;;  %v2648_v58 = vpop.permute.xlu0 %1011 }
 0x46a   : > { %v720_v26 = vpop.permute.xlu1 %719  ;;  %v2687_v34 = vpop.permute.xlu0 %1282 }
 0x46b   : > { %v721_v1 = vrot.slane %v720_v26, 1 }
 0x46d   : > { %v722_v15 = vsel %vm587_vm14, %v720_v26, %v721_v1  ;;  %v838_v26 = vsel %vm554_vm10, %v2594_v42, %v837_v40  ;;  %v2660_v1 = vsel %vm805_vm13, %v804_v25, %v2459_v49  ;;  %v765_v42 = vrot.slane %v2483_v23, 1 }
 0x46e   : > { %v724_v18 = vadd.f32 %v722_v15, %v714_v52  ;;  %v2650_v54 = vpop.permute.xlu1 %981  ;;  %v2664_v15 = vsel %vm951_vm15, %v950_v29, %v2467_v56  ;;  %v755_v52 = vrot.slane %v2475_v2, 1  ;;  %v840_v49 = vadd.f32 %v838_v26, %v830_v14  ;;  %v2712_v57 = vpop.permute.xlu0 %1021 }
 0x46f   : > { %v746_v56 = vsel %vm543_vm9, %v2397_v3, %v745_v12  ;;  %v857_v25 = vrot.slane %v2580_v28, 1  ;;  %v775_v14 = vrot.slane %v2491_v32, 1  ;;  %v1245_v3 = vstv %s2643_s17 }
 0x470   : > { %v734_v11 = vadd.f32 %v732_v35, %v724_v18  ;;  %v2674_v18 = vmul.f32 %v1028_v63, %v2330_v59  ;;  %v850_v29 = vadd.f32 %v848_v62, %v840_v49  ;;  %v756_v63 = vsel %vm554_vm10, %v2475_v2, %v755_v52 }
 0x471   : > { %v891_v35 = vrot.slane %v2399_v4, 1  ;;  %v766_v44 = vsel %vm565_vm11, %v2483_v23, %v765_v42  ;;  %v785_v59 = vrot.slane %v2407_v8, 1  ;;  %v877_v62 = vrot.slane %v2598_v45, 1 }
 0x472   : > { %v738_v40 = vadd.f32 %v737_v20, %v734_v11  ;;  %v2671_v53 = vpop.permute.xlu1 %1252  ;;  %v964_v11 = vstv %s2634_s16  ;;  %v858_v20 = vsel %vm576_vm12, %v2580_v28, %v857_v25  ;;  %v973_v49 = vrot.slane %v2606_v61, 1  ;;  %s1791_s16 = sshll.u32 %s2129_s22, 7  ;;  %s2077_s22 = smov [#allocation11]  }
 0x473   : > { %v901_v52 = vrot.slane %v2401_v5, 1  ;;  %v860_v12 = vadd.f32 %v858_v20, %v850_v29  ;;  %v911_v23 = vrot.slane %v2403_v6, 1  ;;  %v795_v42 = vrot.slane %v2526_v0, 1 }
 0x474   : > { %v748_v27 = vadd.f32 %v746_v56, %v738_v40  ;;  %v776_v40 = vsel %vm576_vm12, %v2491_v32, %v775_v14  ;;  %v892_v25 = vsel %vm543_vm9, %v2399_v4, %v891_v35  ;;  %v921_v14 = vrot.slane %v2507_v46, 1 }
 0x475   : > { %v786_v29 = vsel %vm587_vm14, %v2407_v8, %v785_v59  ;;  %v902_v4 = vsel %vm554_vm10, %v2401_v5, %v901_v52  ;;  %v965_v35 = vmul.f32 %v964_v11, %v2435_v24  ;;  %v912_v20 = vsel %vm565_vm11, %v2403_v6, %v911_v23 }
 0x476   : > { %v758_v26 = vadd.f32 %v756_v63, %v748_v27  ;;  %v866_v51 = vpop.permute.xlu1 %865  ;;  %v983_v27 = vrot.slane %v2650_v54, 1  ;;  %v1037_v63 = vrot.slane %v2499_v37, 1  ;;  %v922_v6 = vsel %vm576_vm12, %v2507_v46, %v921_v14 }
 0x477   : > { %v867_v2 = vrot.slane %v866_v51, 1  ;;  %v1318_v23 = vrot.slane %v2411_v9, 1 }
 0x478   : > { %v768_v56 = vadd.f32 %v766_v44, %v758_v26  ;;  %v878_v44 = vsel %vm598_vm0, %v2598_v45, %v877_v62  ;;  %v974_v26 = vsel %vm543_vm9, %v2606_v61, %v973_v49  ;;  %v984_v8 = vsel %vm554_vm10, %v2650_v54, %v983_v27 }
 0x479   : > { %v868_v28 = vsel %vm587_vm14, %v866_v51, %v867_v2  ;;  %v796_v2 = vsel %vm598_vm0, %v2526_v0, %v795_v42  ;;  %v1254_v45 = vrot.slane %v2671_v53, 1  ;;  %v2735_v61 = vsel %vm543_vm9, %v2499_v37, %v1037_v63 }
 0x47a   : > { %v870_v22 = vadd.f32 %v868_v28, %v860_v12  ;;  %v2714_v17 = vpop.permute.xlu1 %1127  ;;  %v778_v32 = vadd.f32 %v776_v40, %v768_v56  ;;  %v976_v5 = vadd.f32 %v974_v26, %v965_v35  ;;  %v1173_v62 = vrot.slane %v2405_v7, 1  ;;  %v1293_v40 = vpop.permute.xlu0 %1292 }
 0x47b   : > { %v931_v0 = vrot.slane %v2413_v10, 1  ;;  %v993_v54 = vrot.slane %v2592_v41, 1  ;;  %v1183_v49 = vrot.slane %v2518_v55, 1  ;;  %v1109_v42 = vrot.slane %v2619_v31, 1 }
 0x47c   : > { %v880_v12 = vadd.f32 %v878_v44, %v870_v22  ;;  %v788_v51 = vadd.f32 %v786_v29, %v778_v32  ;;  %v986_v52 = vadd.f32 %v984_v8, %v976_v5  ;;  %v1255_v46 = vsel %vm543_vm9, %v2671_v53, %v1254_v45 }
 0x47d   : > { %v1057_v27 = vrot.slane %v2533_v21, 1  ;;  %v1264_v28 = vrot.slane %v2596_v43, 1  ;;  %v1246_v63 = vmul.f32 %v1245_v3, %v2435_v24  ;;  %v994_v14 = vsel %vm565_vm11, %v2592_v41, %v993_v54 }
 0x47e   : > { %v884_v59 = vadd.f32 %v883_v36, %v880_v12  ;;  %v2737_v11 = vpop.permute.xlu1 %1398  ;;  %v798_v22 = vadd.f32 %v796_v2, %v788_v51  ;;  %v1047_v36 = vrot.slane %v2409_v47, 1  ;;  %v1013_v29 = vrot.slane %v2648_v58, 1  ;;  %v1303_v45 = vpop.permute.xlu0 %1302 }
 0x47f   : > { %v941_v44 = vrot.slane %v2419_v13, 1  ;;  %v1257_v26 = vadd.f32 %v1255_v46, %v1246_v63  ;;  %v996_v35 = vadd.f32 %v994_v14, %v986_v52  ;;  %v3008_v3 = vstv %s2636_s26  ;;  %s3020_s26 = sshll.u32 %s2261_s27, 3 }
 0x480   : > { %v894_v37 = vadd.f32 %v892_v25, %v884_v59  ;;  %v808_v56 = vmul.f32 %v2660_v1, %v798_v22  ;;  %v932_v1 = vsel %vm587_vm14, %v2413_v10, %v931_v0  ;;  %v1110_v51 = vsel %vm543_vm9, %v2619_v31, %v1109_v42  ;;  %s267_s17 = scalar_lea.vmem [#allocation11], %s3020_s26 }
 0x481   : > { %v1023_v2 = vrot.slane %v2712_v57, 1  ;;  %v1119_v41 = vrot.slane %v2584_v30, 1  ;;  %v1265_v8 = vsel %vm554_vm10, %v2596_v43, %v1264_v28  ;;  %v1284_v0 = vrot.slane %v2687_v34, 1 }
 0x482   : > { %v904_v32 = vadd.f32 %v902_v4, %v894_v37  ;;  %v1002_v25 = vpop.permute.xlu1 %1001  ;;  %810 = vrot.lane.b32.xlu1 %v808_v56, %s2071_s9  ;;  %v1101_v4 = vmul.f32 %v3008_v3, %v2435_v24  ;;  %v1129_v31 = vrot.slane %v2714_v17, 1  ;;  %v1267_v56 = vadd.f32 %v1265_v8, %v1257_v26 }
 0x483   : > { %v1003_v53 = vrot.slane %v1002_v25, 1  ;;  %v942_v46 = vsel %vm598_vm0, %v2419_v13, %v941_v44  ;;  %v1024_v43 = vsel %vm598_vm0, %v2712_v57, %v1023_v2  ;;  %v1294_v28 = vrot.slane %v1293_v40, 1  ;;  %v2786_v44 = vpop.permute.xlu0 %1448 }
 0x484   : > { %v914_v12 = vadd.f32 %v912_v20, %v904_v32  ;;  %v1014_v20 = vsel %vm587_vm14, %v2648_v58, %v1013_v29  ;;  %v1112_v52 = vadd.f32 %v1110_v51, %v1101_v4  ;;  %v1067_v58 = vrot.slane %v2549_v39, 1 }
 0x485   : > { %v1004_v10 = vsel %vm576_vm12, %v1002_v25, %v1003_v53  ;;  %v1120_v29 = vsel %vm554_vm10, %v2584_v30, %v1119_v41  ;;  %v1304_v53 = vrot.slane %v1303_v45, 1  ;;  %v1130_v13 = vsel %vm565_vm11, %v2714_v17, %v1129_v31 }
 0x486   : > { %v1006_v5 = vadd.f32 %v1004_v10, %v996_v35  ;;  %v1273_v59 = vpop.permute.xlu1 %1272  ;;  %v924_v22 = vadd.f32 %v922_v6, %v914_v12  ;;  %v1122_v57 = vadd.f32 %v1120_v29, %v1112_v52  ;;  %v1139_v3 = vrot.slane %v2604_v60, 1 }
 0x487   : > { %v1274_v54 = vrot.slane %v1273_v59, 1  ;;  %v1295_v4 = vsel %vm587_vm14, %v1293_v40, %v1294_v28  ;;  %v1400_v30 = vrot.slane %v2737_v11, 1  ;;  %v1305_v40 = vsel %vm598_vm0, %v1303_v45, %v1304_v53 }
 0x488   : > { %v1016_v37 = vadd.f32 %v1014_v20, %v1006_v5  ;;  %v934_v42 = vadd.f32 %v932_v1, %v924_v22  ;;  %v1285_v1 = vsel %vm576_vm12, %v2687_v34, %v1284_v0  ;;  %v1048_v34 = vsel %vm554_vm10, %v2409_v47, %v1047_v36  ;;  %v2818_v22 = vpop.permute.xlu0 %1492 }
 0x489   : > { %v1275_v6 = vsel %vm565_vm11, %v1273_v59, %v1274_v54  ;;  %v1132_v2 = vadd.f32 %v1130_v13, %v1122_v57  ;;  %v1328_v47 = vrot.slane %v2541_v33, 1  ;;  %v1338_v36 = vrot.slane %v2559_v48, 1  ;;  %v3011_v57 = vld [vmem:[#allocation26_spill] sm:$0xff] }
 0x48a   : > { %v1026_v63 = vadd.f32 %v1024_v43, %v1016_v37  ;;  %v1277_v32 = vadd.f32 %v1275_v6, %v1267_v56  ;;  %v1148_v25 = vpop.permute.xlu1 %1147  ;;  %v944_v14 = vadd.f32 %v942_v46, %v934_v42  ;;  %v1077_v59 = vrot.slane %v2425_v16, 1  ;;  %v3010_v43 = vld [vmem:[#allocation22_spill] sm:$0xff] }
 0x48b   : > { %v1149_v51 = vrot.slane %v1148_v25, 1  ;;  %v1087_v54 = vrot.slane %v2576_v19, 1  ;;  %v1410_v52 = vrot.slane %v2624_v38, 1  ;;  %v1348_v28 = vrot.slane %v3010_v43, 1 }
 0x48c   : > { %v1030_v26 = vadd.f32 %v2674_v18, %v1026_v63  ;;  %v1287_v35 = vadd.f32 %v1285_v1, %v1277_v32  ;;  %v954_v12 = vmul.f32 %v2664_v15, %v944_v14  ;;  %v1319_v15 = vsel %vm543_vm9, %v2411_v9, %v1318_v23  ;;  %v1367_v53 = vpop.permute.xlu0 %1366 }
 0x48d   : > { %v1058_v18 = vsel %vm565_vm11, %v2533_v21, %v1057_v27  ;;  %v1140_v9 = vsel %vm576_vm12, %v2604_v60, %v1139_v3  ;;  %v1401_v23 = vsel %vm543_vm9, %v2737_v11, %v1400_v30  ;;  %v1150_v21 = vsel %vm587_vm14, %v1148_v25, %v1149_v51  ;;  %v3012_v3 = vld [vmem:[#allocation18_spill] sm:$0xff]  ;;  %v3013_v30 = vld [vmem:[#allocation20_spill] sm:$0xff] }
 0x48e   : > { %v1040_v17 = vadd.f32 %v2735_v61, %v1030_v26  ;;  %v1297_v10 = vadd.f32 %v1295_v4, %v1287_v35  ;;  %v1419_v41 = vpop.permute.xlu1 %1418  ;;  %956 = vrot.lane.b32.xlu0 %v954_v12, %s2072_s28  ;;  %v1068_v61 = vsel %vm576_vm12, %v2549_v39, %v1067_v58  ;;  %v3009_v27 = vstv %s2645_s30  ;;  %s1571_s30 = sshll.u32 %s267_s17, 4  ;;  %s2911_s30 = int_to_ptr.vmem [resolvable:$true] %s1571_s30 }
 0x48f   : > { %v1392_v45 = vmul.f32 %v3009_v27, %v2435_v24  ;;  %v1142_v20 = vadd.f32 %v1140_v9, %v1132_v2  ;;  %v1420_v60 = vrot.slane %v1419_v41, 1  ;;  %v1329_v24 = vsel %vm554_vm10, %v2541_v33, %v1328_v47 }
 0x490   : > { %v1050_v8 = vadd.f32 %v1048_v34, %v1040_v17  ;;  %v1307_v5 = vadd.f32 %v1305_v40, %v1297_v10  ;;  %v1339_v58 = vsel %vm565_vm11, %v2559_v48, %v1338_v36  ;;  %v1088_v29 = vsel %vm598_vm0, %v2576_v19, %v1087_v54  ;;  %v1900_v54 = vld [vmem:[#allocation3 + $0x1] ss:$2 sm:$0x7] }
 0x491   : > { %v1403_v56 = vadd.f32 %v1401_v23, %v1392_v45  ;;  %v1152_v11 = vadd.f32 %v1150_v21, %v1142_v20  ;;  %v1411_v33 = vsel %vm554_vm10, %v2624_v38, %v1410_v52  ;;  %v1421_v1 = vsel %vm565_vm11, %v1419_v41, %v1420_v60  ;;  %v3016_v23 = vld [vmem:[#allocation25_spill] sm:$0xff] }
 0x492   : > { %v1311_v39 = vadd.f32 %v2680_v50, %v1307_v5  ;;  %v1158_v0 = vpop.permute.xlu1 %1157  ;;  %v1060_v31 = vadd.f32 %v1058_v18, %v1050_v8  ;;  %v1078_v50 = vsel %vm587_vm14, %v2425_v16, %v1077_v59  ;;  %v1174_v48 = vsel %vm543_vm9, %v2405_v7, %v1173_v62  ;;  %v3015_v8 = vld [vmem:[#allocation23_spill] sm:$0xff] }
 0x493   : > { %v1159_v37 = vrot.slane %v1158_v0, 1  ;;  %v1413_v13 = vadd.f32 %v1411_v33, %v1403_v56  ;;  %v1193_v19 = vrot.slane %v3012_v3, 1  ;;  %v1349_v38 = vsel %vm576_vm12, %v3010_v43, %v1348_v28 }
 0x494   : > { %v1070_v42 = vadd.f32 %v1068_v61, %v1060_v31  ;;  %v1321_v46 = vadd.f32 %v1319_v15, %v1311_v39  ;;  %v1203_v51 = vrot.slane %v3013_v30, 1  ;;  %v1184_v7 = vsel %vm554_vm10, %v2518_v55, %v1183_v49  ;;  %v3014_v61 = vld [vmem:[#allocation19_spill] sm:$0xff]  ;;  %v1376_v49 = vpop.permute.xlu0 %1375 }
 0x495   : > { %v1160_v6 = vsel %vm598_vm0, %v1158_v0, %v1159_v37  ;;  %v1423_v34 = vadd.f32 %v1421_v1, %v1413_v13  ;;  %v1450_v62 = vrot.slane %v2786_v44, 1  ;;  %v1455_v47 = vstv %s2823_s24  ;;  %s2909_s24 = scalar_lea.hbm %s2958_s5, %s1791_s16 }
 0x496   : > { %v1162_v63 = vadd.f32 %v1160_v6, %v1152_v11  ;;  %v1429_v32 = vpop.permute.xlu1 %1428  ;;  %v1080_v25 = vadd.f32 %v1078_v50, %v1070_v42  ;;  %v1331_v14 = vadd.f32 %v1329_v24, %v1321_v46  ;;  %v1194_v40 = vsel %vm565_vm11, %v3012_v3, %v1193_v19  ;;  %v3017_v42 = vld [vmem:[#allocation21_spill] sm:$0xff]  ;;  %v3018_v50 = vld [vmem:[#allocation24_spill] sm:$0xff] }
 0x497   : > { %v1430_v16 = vrot.slane %v1429_v32, 1  ;;  %v1464_v36 = vrot.slane %v3014_v61, 1  ;;  %v1213_v5 = vrot.slane %v3015_v8, 1  ;;  %v1204_v9 = vsel %vm576_vm12, %v3013_v30, %v1203_v51 }
 0x498   : > { %v1166_v26 = vadd.f32 %v3011_v57, %v1162_v63  ;;  %v1090_v35 = vadd.f32 %v1088_v29, %v1080_v25  ;;  %v1341_v12 = vadd.f32 %v1339_v58, %v1331_v14  ;;  %v1223_v55 = vrot.slane %v3016_v23, 1 }
 0x499   : > { %v1431_v4 = vsel %vm576_vm12, %v1429_v32, %v1430_v16  ;;  %v1451_v39 = vsel %vm598_vm0, %v2786_v44, %v1450_v62  ;;  %v1368_v20 = vrot.slane %v1367_v53, 1  ;;  %v1377_v0 = vrot.slane %v1376_v49, 7 }
 0x49a   : > { %v1176_v2 = vadd.f32 %v1174_v48, %v1166_v26  ;;  %v1439_v17 = vpop.permute.xlu1 %1438  ;;  %1092 = vrot.lane.b32.xlu1 %v1090_v35, %s2073_s29  ;;  %v1351_v10 = vadd.f32 %v1349_v38, %v1341_v12  ;;  %v1433_v18 = vadd.f32 %v1431_v4, %v1423_v34  ;;  %v1456_v52 = vmul.f32 %v1900_v54, %v1455_v47  ;;  %v1522_v4 = vpop.permute.xlu0 %1521  ;;  %s1557_s29 = scalar_lea.sflag [#allocation6], %s2261_s27 }
 0x49b   : > { %v1440_v41 = vrot.slane %v1439_v17, 1  ;;  %v1465_v56 = vsel %vm543_vm9, %v3014_v61, %v1464_v36  ;;  %v1214_v11 = vsel %vm587_vm14, %v3015_v8, %v1213_v5  ;;  %v1474_v46 = vrot.slane %v3017_v42, 1 }
 0x49c   : > { %v1186_v15 = vadd.f32 %v1184_v7, %v1176_v2  ;;  %v1484_v44 = vrot.slane %v3018_v50, 1  ;;  %v1224_v63 = vsel %vm598_vm0, %v3016_v23, %v1223_v55  ;;  %v1369_v32 = vsel %vm598_vm0, %v1367_v53, %v1368_v20 }
 0x49d   : > { %v1441_v59 = vsel %vm587_vm14, %v1439_v17, %v1440_v41  ;;  %v1379_v25 = vsel %vm1378_vm1, %v1377_v0, %v1376_v49  ;;  %v1475_v16 = vsel %vm554_vm10, %v3017_v42, %v1474_v46  ;;  %v1494_v13 = vrot.slane %v2818_v22, 1  ;;  %v603_v42 = vld [vmem:[#allocation3 + $0x1] ss:$2 sm:$0x3] }
 0x49e   : > { %v1443_v21 = vadd.f32 %v1441_v59, %v1433_v18  ;;  %v1357_v27 = vpop.permute.xlu1 %1356  ;;  %v1196_v45 = vadd.f32 %v1194_v40, %v1186_v15  ;;  %v1485_v53 = vsel %vm565_vm11, %v3018_v50, %v1484_v44  ;;  %v1523_v34 = vrot.slane %v1522_v4, 7  ;;  %v552_v61 = vpop.permute.xlu0 %551 }
 0x49f   : > { %v1358_v31 = vrot.slane %v1357_v27, 1  ;;  %v1495_v38 = vsel %vm576_vm12, %v2818_v22, %v1494_v13  ;;  %v531_v22 = vld [vmem:[#allocation3] ss:$2 sm:$0x3]  ;;  %v532_v40 = vstv %s530_s23  ;;  %v553_v59 = vrot.slane %v552_v61, 1 }
 0x4a0   : > { %v1453_v60 = vadd.f32 %v1451_v39, %v1443_v21  ;;  %v1206_v37 = vadd.f32 %v1204_v9, %v1196_v45  ;;  %v533_v8 = vmul.f32 %v532_v40, %v531_v22  ;;  %v604_v46 = vstv %s1688_s14 }
 0x4a1   : > { %v1359_v24 = vsel %vm587_vm14, %v1357_v27, %v1358_v31  ;;  %v555_v55 = vsel %vm554_vm10, %v552_v61, %v553_v59  ;;  %v605_v44 = vmul.f32 %v604_v46, %v603_v42  ;;  %v3021_v46 = vld [vmem:[#allocation17_spill] sm:$0xff] }
 0x4a2   : > { %v1457_v43 = vadd.f32 %v1456_v52, %v1453_v60  ;;  %v1361_v28 = vadd.f32 %v1359_v24, %v1351_v10  ;;  %v1231_v6 = vpop.permute.xlu1 %1230  ;;  %v1216_v58 = vadd.f32 %v1214_v11, %v1206_v37  ;;  %v574_v49 = vpop.permute.xlu0 %573 }
 0x4a3   : > { %v1232_v14 = vrot.slane %v1231_v6, 7  ;;  %v575_v39 = vrot.slane %v574_v49, 1 }
 0x4a4   : > { %v1467_v29 = vadd.f32 %v1465_v56, %v1457_v43  ;;  %v1371_v33 = vadd.f32 %v1369_v32, %v1361_v28  ;;  %v1226_v1 = vadd.f32 %v1224_v63, %v1216_v58 }
 0x4a5   : > { %v1233_v57 = vsel %vm282_vm2, %v1232_v14, %v1231_v6  ;;  %vm1524_vm2 = vcmask 48128   ;;  %v577_v31 = vsel %vm576_vm12, %v574_v49, %v575_v39 }
 0x4a6   : > { %v1381_v26 = vmul.f32 %v1379_v25, %v1371_v33  ;;  %v1235_v35 = vmul.f32 %v1233_v57, %v1226_v1  ;;  %v1503_v12 = vpop.permute.xlu1 %1502  ;;  %v1477_v48 = vadd.f32 %v1475_v16, %v1467_v29  ;;  %v1525_v41 = vsel %vm1524_vm2, %v1523_v34, %v1522_v4  ;;  %v596_v54 = vpop.permute.xlu0 %595 }
 0x4a7   : > { %v1504_v3 = vrot.slane %v1503_v12, 1  ;;  %v597_v37 = vrot.slane %v596_v54, 1 }
 0x4a8   : > { %v1487_v19 = vadd.f32 %v1485_v53, %v1477_v48  ;;  %1237 = vrot.lane.b32.xlu0 %v1235_v35, %s2074_s6  ;;  %1383 = vrot.lane.b32.xlu1 %v1381_v26, %s2075_s13  ;;  %s1974_s6 = scalar_lea.vmem %s2911_s30, 128  ;;  %s1978_s13 = sshll.u32 %s2077_s22, 4  ;;  %s1979_s13 = int_to_ptr.vmem [resolvable:$false] %s1978_s13 }
 0x4a9   : > { %v1505_v2 = vsel %vm587_vm14, %v1503_v12, %v1504_v3  ;;  %v599_v11 = vsel %vm598_vm0, %v596_v54, %v597_v37  ;;  %v3019_v54 = vld [vmem:[#allocation16_spill] sm:$0xff]  ;;  %p1975_p7 = scmp.ne.s32.totalorder %s2911_s30, %s1974_s6  ;;  %p1981_p2 = scmp.lt.s32.totalorder %s2911_s30, %s1979_s13 }
 0x4aa   : > { %v1497_v30 = vadd.f32 %v1495_v38, %v1487_v19  ;;  %v1513_v51 = vpop.permute.xlu1 %1512  ;;  %v623_v28 = vpop.permute.xlu0 %622 }
 0x4ab   : > { %v1514_v17 = vrot.slane %v1513_v51, 1  ;;  %v624_v58 = vrot.slane %v623_v28, 1  ;;  %p1976_p12 = pnand %p1975_p7, %p2215_p10 }
 0x4ac   : > { %v1507_v10 = vadd.f32 %v1505_v2, %v1497_v30 }
 0x4ad   : > { %v1515_v7 = vsel %vm598_vm0, %v1513_v51, %v1514_v17  ;;  %v625_v14 = vsel %vm554_vm10, %v623_v28, %v624_v58  ;;  %p1977_p9 = pneg %p1976_p12 }
 0x4ae   : > { %v1517_v62 = vadd.f32 %v1515_v7, %v1507_v10  ;;  %v541_v18 = vpop.permute.xlu1 %540  ;;  %v643_v33 = vpop.permute.xlu0 %642  ;;  %v668_v10 = vld [vmem:[%s2956_s3] ss:$8 sm:$0x3] }
 0x4af   : > { %v542_v47 = vrot.slane %v541_v18, 1  ;;  %v644_v16 = vrot.slane %v643_v33, 1 }
 0x4b0   : > { %v1527_v15 = vmul.f32 %v1525_v41, %v1517_v62 }
 0x4b1   : > { %v544_v36 = vsel %vm543_vm9, %v541_v18, %v542_v47  ;;  %v645_v35 = vsel %vm576_vm12, %v643_v33, %v644_v16 }
 0x4b2   : > { %1529 = vrot.lane.b32.xlu0 %v1527_v15, %s2076_s12  ;;  %v563_v5 = vpop.permute.xlu1 %562  ;;  %v546_v9 = vadd.f32 %v544_v36, %v533_v8  ;;  %v663_v48 = vpop.permute.xlu0 %662  ;;  %s1980_s12 = scalar_lea.vmem %s1979_s13, 256 }
 0x4b3   : > { %v564_v23 = vrot.slane %v563_v5, 1  ;;  %v664_v3 = vrot.slane %v663_v48, 1  ;;  %p1982_p4 = scmp.lt.s32.totalorder %s1980_s12, %s1974_s6 }
 0x4b4   : > { %v557_v21 = vadd.f32 %v555_v55, %v546_v9 }
 0x4b5   : > { %v566_v27 = vsel %vm565_vm11, %v563_v5, %v564_v23  ;;  %v665_v51 = vsel %vm598_vm0, %v663_v48, %v664_v3  ;;  %p1983_p6 = por %p1982_p4, %p1981_p2 }
 0x4b6   : > { %v585_v45 = vpop.permute.xlu1 %584  ;;  %v568_v20 = vadd.f32 %v566_v27, %v557_v21 }
 0x4b7   : > { %v586_v0 = vrot.slane %v585_v45, 1  ;;  %p1984_p8 = pnand %p1983_p6, %p1977_p9 }
 0x4b8   : > { %v579_v52 = vadd.f32 %v577_v31, %v568_v20 }
 0x4b9   : > { %v588_v60 = vsel %vm587_vm14, %v585_v45, %v586_v0 }
 0x4ba   : > { %v590_v56 = vadd.f32 %v588_v60, %v579_v52  ;;  %v613_v50 = vpop.permute.xlu1 %612  ;;  %v1546_v52 = vsub.s32 0, %v3019_v54  ;;  %v1550_v60 = vsub.s32 1, %v3019_v54 }
 0x4bb   : > { %v614_v43 = vrot.slane %v613_v50, 1 }
 0x4bc   : > { %v601_v24 = vadd.f32 %v599_v11, %v590_v56 }
 0x4bd   : > { %v615_v63 = vsel %vm543_vm9, %v613_v50, %v614_v43 }
 0x4be   : > { %v606_v6 = vadd.f32 %v605_v44, %v601_v24  ;;  %v633_v25 = vpop.permute.xlu1 %632 }
 0x4bf   : > { %v634_v29 = vrot.slane %v633_v25, 1 }
 0x4c0   : > { %v617_v32 = vadd.f32 %v615_v63, %v606_v6 }
 0x4c1   : > { %v635_v13 = vsel %vm565_vm11, %v633_v25, %v634_v29 }
 0x4c2   : > { %v627_v1 = vadd.f32 %v625_v14, %v617_v32  ;;  %v653_v26 = vpop.permute.xlu1 %652 }
 0x4c3   : > { %v654_v12 = vrot.slane %v653_v26, 1 }
 0x4c4   : > { %v637_v57 = vadd.f32 %v635_v13, %v627_v1 }
 0x4c5   : > { %v655_v19 = vsel %vm587_vm14, %v653_v26, %v654_v12 }
 0x4c6   : > { %v647_v53 = vadd.f32 %v645_v35, %v637_v57 }
 0x4c8   : > { %v657_v38 = vadd.f32 %v655_v19, %v647_v53 }
 0x4ca   : > { %v667_v2 = vadd.f32 %v665_v51, %v657_v38 }
 0x4cc   : > { %v669_v15 = vmul.f32 %v668_v10, %v667_v2 }
 0x4f4   : > { %v811_v4 = vpop.permute.xlu1 %810 }
 0x4f5   : > { %v812_v34 = vrot.slane %v811_v4, 1 }
 0x4f7   : > { %v814_v62 = vsel %vm813_vm3, %v811_v4, %v812_v34 }
 0x4f8   : > { %v816_v40 = vadd.f32 %v814_v62, %v669_v15 }
 0x500   : > { %v957_v30 = vpop.permute.xlu0 %956 }
 0x501   : > { %v958_v7 = vrot.slane %v957_v30, 1 }
 0x503   : > { %v960_v47 = vsel %vm959_vm4, %v957_v30, %v958_v7 }
 0x504   : > { %v962_v36 = vadd.f32 %v960_v47, %v816_v40 }
 0x50c   : > { %v1093_v17 = vpop.permute.xlu1 %1092 }
 0x50d   : > { %v1094_v41 = vrot.slane %v1093_v17, 1 }
 0x50f   : > { %v1096_v61 = vsel %vm1095_vm5, %v1093_v17, %v1094_v41 }
 0x510   : > { %v1098_v59 = vadd.f32 %v1096_v61, %v962_v36 }
 0x51a   : > { %v1238_v18 = vpop.permute.xlu0 %1237  ;;  %v1384_v8 = vpop.permute.xlu1 %1383 }
 0x51b   : > { %v1239_v22 = vrot.slane %v1238_v18, 1  ;;  %v1385_v9 = vrot.slane %v1384_v8, 1 }
 0x51d   : > { %v1241_v5 = vsel %vm1240_vm6, %v1238_v18, %v1239_v22  ;;  %v1387_v49 = vsel %vm1386_vm7, %v1384_v8, %v1385_v9 }
 0x51e   : > { %v1243_v23 = vadd.f32 %v1241_v5, %v1098_v59 }
 0x520   : > { %v1389_v27 = vadd.f32 %v1387_v49, %v1243_v23 }
 0x524   : > { %v1530_v55 = vpop.permute.xlu0 %1529 }
 0x525   : > { %v1531_v21 = vrot.slane %v1530_v55, 1 }
 0x527   : > { %v1533_v45 = vsel %vm1532_vm8, %v1530_v55, %v1531_v21 }
 0x528   : > { %v1535_v39 = vadd.f32 %v1533_v45, %v1389_v27 }
 0x52a   : > { %v1784_v20 = vmul.f32 -1.442695, %v1535_v39 }
 0x52c   : > { %1896 = vpow2.f32 %v1784_v20 }
 0x536   : > { %v1897_v0 = vpop.eup %1896 }
 0x537   : > { %v1539_v31 = vadd.f32 1.0, %v1897_v0 }
 0x539   : > { %1898 = vrcp.f32 %v1539_v31 }
 0x543   : > { %v1899_v37 = vpop.eup %1898 }
 0x544   : > { %v1547_v56 = vrot.slane %v1899_v37, %v1546_v52  ;;  %v1551_v11 = vrot.slane %v1899_v37, %v1550_v60 }
 0x546   : > { %v1552_v42 = vcombine.low %v1547_v56, %v1551_v11 }
 0x548   : > { %v1554_v24 = vmul.f32 %v1552_v42, %v3021_v46 }
 0x54a   : > { %1555 = vst [vmem:[%s267_s17] sm:$0xff] %v1554_v24 }
 0x54b   : > { %1987 = shalt.err (!%p1984_p8)
}
 0x54c   : > { %s1988_s27 = scalar_lea.hbm %s2909_s24, 128  ;;  %s1992_s15 = scalar_lea.hbm %s2958_s5, 256 }
 0x54d   : > { %p1989_p1 = scmp.ne.s32.totalorder %s2909_s24, %s1988_s27  ;;  %p1993_p13 = scmp.lt.u32.totalorder %s2909_s24, %s2958_s5 }
 0x54e   : > { %p1994_p3 = scmp.lt.u32.totalorder %s1992_s15, %s1988_s27  ;;  %p1996_p7 = scmp.lt.u32.totalorder %s1988_s27, %s2909_s24 }
 0x54f   : > { %p1990_p0 = pnand %p1989_p1, %p2215_p10 }
 0x550   : > { %p1995_p5 = por %p1994_p3, %p1993_p13 }
 0x551   : > { %p1991_p11 = pneg %p1990_p0 }
 0x552   : > { %p1997_p12 = por %p1996_p7, %p1995_p5 }
 0x554   : > { %p1998_p9 = pnand %p1997_p12, %p1991_p11 }
 0x556   : > { %2001 = shalt.err (!%p1998_p9)
}
 0x557   : > { %1809 = dma.vmem_to_hbm [thread:$0]  (%p2215_p10), %s2911_s30, 128, %s2909_s24, %s1557_s29  }
 0x558 PF: > { %s1583_s26 = sand.u32 1, %s2036_s18   ;;  %p3022_p2 = scmp.ne.s32.totalorder %s2979_s25, 0 }
 0x559   : > { %p3023_p4 = scmp.ge.s32.totalorder %s2048_s21, 2  ;;  %s1584_s17 = scalar_lea.sflag [#allocation6], %s1583_s26 }
 0x55b   : > { %p1823_p6 = pnand %p3023_p4, %p3022_p2 }
 0x55d   : > { %2031 = dma.done.wait (!%p1823_p6), %s1584_s17, 128  }
 0x55e   : > { %2033 = vsyncadd (!%p1823_p6), %s1584_s17, 4294967168  ;;  %p20_p8 = scmp.ge.s32.totalorder %s2167_s8, 4   ;;  %s3024_s18 = smov %s2040_s19 }
 0x55f   : > { %s3025_s19 = smov %s2044_s20  ;;  %s3026_s20 = smov %s2211_s10 }
 0x560   : > { %s3027_s21 = smov %s2167_s8  ;;  %22 = sbr.rel (!%p20_p8) target bundleno = 7 (0x7), region = 100 }
 0x567   :  { %1589 = vsyncpa [#allocation5], 1 }
 0x568   :  { %1591 = vsyncpa [#allocation5 + $0x1], 1 }
 0x569   :  { %1592 = vsyncpa [#allocation9], 1 }
 0x56a   :  { %1593 = vsyncpa [#allocation6], 1 }
 0x56b   :  { %1595 = vsyncpa [#allocation6 + $0x1], 1 }
 0x56c   :  { %1596 = vsyncpa [#allocation7], 1 }
 0x56d   :  { %1598 = vsyncpa [#allocation7 + $0x1], 1 }

</bundles_post_ra>
